<compile_context>
chip_gen: v7x
topology: tpu7x:2x2x1
jax: 0.10.0
libtpu: 0.0.40
codegen_flags: <defaults>
</compile_context>

<pallas_src>
import jax
import jax.numpy as jnp
from jax import lax
from jax.experimental import pallas as pl
from jax.experimental.pallas import tpu as pltpu

LANE = 128  # lane-dense feature padding


# ----------------------------------------------------------------------------
# Fused forward kernel (all levels, upward + downward, in one body)
# ----------------------------------------------------------------------------
def _make_fused_kernel(sizes, max_level, n_pad, f_pad, fuse_k, mxu_dtype):
    n_up = max_level - 1  # number of upward layers (k = 2..max_level)

    def kernel(feat_ref, *refs):
        up_refs = refs[0:2 * n_up]            # (W, b) for d_up_k,   k = 2..max_level
        dn_refs = refs[2 * n_up:4 * n_up]     # (W, b) for d_down_k, k = 1..max_level-1
        out_ref = refs[4 * n_up]
        h_scr = refs[4 * n_up + 1:]           # h_scr[j] holds h[level j+2]

        # Hoisted once: row-index column reused by every mask (no per-call
        # (n_pad,128) iota re-materialization on the VPU).
        rows = lax.broadcasted_iota(jnp.int32, (n_pad, 1), 0)

        def masked(h, n_valid):
            # zero rows >= n_valid so shifted padding never contaminates valid nodes
            return jnp.where(rows < n_valid, h, 0.0)

        def layer(h_a, h_b, w_ref, b_ref):
            # SiLU( concat(h_a, h_b) @ W + b ); W stored stacked as [2*f_pad, f_pad]
            if fuse_k:
                # single K=2*f_pad contraction (matches 256-deep MXU on v6e/v7x)
                hab = jnp.concatenate([h_a, h_b], axis=1).astype(mxu_dtype)
                z = jnp.dot(hab, w_ref[...], preferred_element_type=jnp.float32)
            else:
                # split K=f_pad dots (v5e: 128-deep MXU)
                z = (jnp.dot(h_a.astype(mxu_dtype), w_ref[pl.ds(0, f_pad), :],
                             preferred_element_type=jnp.float32)
                     + jnp.dot(h_b.astype(mxu_dtype), w_ref[pl.ds(f_pad, f_pad), :],
                               preferred_element_type=jnp.float32))
            z = z + b_ref[...]
            # SiLU via EUP tanh: sigmoid(z) = 0.5*(tanh(z/2)+1); no f32 divide,
            # no exp(-z) overflow.
            return z * (0.5 * jnp.tanh(0.5 * z) + 0.5)

        # ------------------------------ upward ------------------------------
        for k in range(2, max_level + 1):
            w_ref, b_ref = up_refs[2 * (k - 2)], up_refs[2 * (k - 2) + 1]
            h_prev = feat_ref[...] if k == 2 else h_scr[k - 3][...]
            # position-1 child of parent i is node i+1 below: out[i] = h_prev[i+1]
            h_next = pltpu.roll(h_prev, shift=n_pad - 1, axis=0)
            h_scr[k - 2][...] = masked(layer(h_prev, h_next, w_ref, b_ref),
                                       sizes[k])

        # ----------------------------- downward -----------------------------
        for k in range(max_level, 1, -1):
            w_ref, b_ref = dn_refs[2 * (k - 2)], dn_refs[2 * (k - 2) + 1]
            h_k = h_scr[k - 2][...]                       # zero beyond sizes[k]
            # node j of level k-1 has parents j (pos 0) and j-1 (pos 1)
            h_down = h_k + pltpu.roll(h_k, shift=1, axis=0)
            h_cur = feat_ref[...] if k == 2 else h_scr[k - 3][...]
            h_new = layer(h_cur, h_down, w_ref, b_ref)
            if k == 2:
                # final mask skipped: the wrapper slices out[:n1, :f_out]
                out_ref[...] = h_new
            else:
                h_scr[k - 3][...] = masked(h_new, sizes[k - 1])

    return kernel


# ----------------------------------------------------------------------------
# Wrapper: lane-dense packing of weights/features + single pallas_call
# ----------------------------------------------------------------------------
def _pad_linear(w, b, fin_a, fin_b, fout, f_pad, w_dtype):
    """Pack Linear(fin_a + fin_b -> fout) as a lane-dense [2*f_pad, f_pad] slab."""
    w0 = jnp.zeros((f_pad, f_pad), jnp.float32).at[:fin_a, :fout].set(w[:fin_a])
    w1 = jnp.zeros((f_pad, f_pad), jnp.float32).at[:fin_b, :fout].set(w[fin_a:])
    bp = jnp.zeros((1, f_pad), jnp.float32).at[0, :fout].set(b)
    return jnp.concatenate([w0, w1], axis=0).astype(w_dtype), bp


def _default_fuse_k():
    # Fused K=256 dot only pays off where the MXU is 256 deep (v6e / v7x).
    try:
        kind = jax.devices()[0].device_kind.lower()
    except Exception:
        return True
    return not any(t in kind for t in ("v2", "v3", "v4", "v5"))


def hpno_forward(feat, params, max_level, *, f_pad=LANE, fuse_k=None,
                 mxu_dtype=jnp.float32):
    n1, f_in = feat.shape
    hidden = params["up"][2][0].shape[1]
    f_out = params["down"][1][0].shape[1]
    assert max_level >= 2 and n1 >= max_level
    assert f_pad % LANE == 0 and f_pad >= max(f_in, hidden, f_out)
    if fuse_k is None:
        fuse_k = _default_fuse_k()

    sizes = {k: n1 - k + 1 for k in range(1, max_level + 1)}
    n_pad = max(8, -(-n1 // 8) * 8)

    feat_p = jnp.zeros((n_pad, f_pad), jnp.float32).at[:n1, :f_in].set(feat)

    operands = [feat_p]
    for k in range(2, max_level + 1):                        # d_up_k
        w, b = params["up"][k]
        fin = w.shape[0] // 2
        operands += list(_pad_linear(w, b, fin, fin, w.shape[1], f_pad, mxu_dtype))
    for idx in range(1, max_level):                          # d_down_idx
        w, b = params["down"][idx]
        fin = w.shape[0] - hidden
        operands += list(_pad_linear(w, b, fin, hidden, w.shape[1], f_pad, mxu_dtype))

    n_layers = 2 * (max_level - 1)
    node_buf = 4 * n_pad * f_pad                              # one f32 node buffer
    cost = pl.CostEstimate(
        flops=2 * n_layers * 2 * n_pad * f_pad * f_pad,
        transcendentals=n_layers * n_pad * f_pad,
        bytes_accessed=(sum(int(o.size) * jnp.dtype(o.dtype).itemsize
                            for o in operands) + node_buf),
    )

    # VMEM budget: weight slabs + feat + out + (max_level-1) scratch levels
    # (+ headroom for the in-kernel concat temp); floor at the largest default.
    footprint = (sum(int(o.size) * jnp.dtype(o.dtype).itemsize for o in operands)
                 + (max_level + 2) * node_buf)
    vmem_limit = int(min(64 << 20, max(32 << 20, 2 * footprint)))

    vmem = pl.BlockSpec(memory_space=pltpu.MemorySpace.VMEM)
    out = pl.pallas_call(
        _make_fused_kernel(sizes, max_level, n_pad, f_pad, fuse_k, mxu_dtype),
        out_shape=jax.ShapeDtypeStruct((n_pad, f_pad), jnp.float32),
        in_specs=[vmem] * len(operands),
        out_specs=vmem,
        scratch_shapes=[pltpu.VMEM((n_pad, f_pad), jnp.float32)
                        for _ in range(max_level - 1)],
        compiler_params=pltpu.CompilerParams(vmem_limit_bytes=vmem_limit),
        cost_estimate=cost,
    )(*operands)
    return out[:n1, :f_out]


# ----------------------------------------------------------------------------
# Parameter init (PyTorch nn.Linear default: U(-1/sqrt(fan_in), 1/sqrt(fan_in)))
# d_up_k  : Linear(2*Fin, H),     k = 2..max_level, Fin = in  if k==2 else H
# d_down_k: Linear(Fin+H, Fout),  k = 1..max_level-1,
#           (Fin,Fout) = (in,out) if k==1 else (H,H)
# ----------------------------------------------------------------------------
def init_params(key, in_features, out_features, hidden, max_level):
    params = {"up": {}, "down": {}}
    for idx in range(2, max_level + 1):
        fin = in_features if idx == 2 else hidden
        key, k1, k2 = jax.random.split(key, 3)
        bound = 1.0 / jnp.sqrt(2.0 * fin)
        w = jax.random.uniform(k1, (2 * fin, hidden), jnp.float32, -bound, bound)
        b = jax.random.uniform(k2, (hidden,), jnp.float32, -bound, bound)
        params["up"][idx] = (w, b)
    for idx in range(1, max_level):
        fin = in_features if idx == 1 else hidden
        fout = out_features if idx == 1 else hidden
        key, k1, k2 = jax.random.split(key, 3)
        bound = 1.0 / jnp.sqrt(float(fin + hidden))
        w = jax.random.uniform(k1, (fin + hidden, fout), jnp.float32, -bound, bound)
        b = jax.random.uniform(k2, (fout,), jnp.float32, -bound, bound)
        params["down"][idx] = (w, b)
    return params


# ----------------------------------------------------------------------------
# Pure-JAX reference (mirrors the DGL semantics with gathers / scatter-adds)
# ----------------------------------------------------------------------------
def hpno_reference(feat, params, max_level):
    def silu(z):
        return z * jax.nn.sigmoid(z)

    h = {1: feat}
    for k in range(2, max_level + 1):
        nk = h[k - 1].shape[0] - 1
        idx = jnp.arange(nk)
        h0, h1 = h[k - 1][idx], h[k - 1][idx + 1]
        w, b = params["up"][k]
        h[k] = silu(jnp.concatenate([h0, h1], axis=-1) @ w + b)
    for k in range(max_level, 1, -1):
        nk, nprev = h[k].shape[0], h[k - 1].shape[0]
        idx = jnp.arange(nk)
        h_down = (jnp.zeros((nprev, h[k].shape[1]), jnp.float32)
                  .at[idx].add(h[k]).at[idx + 1].add(h[k]))
        w, b = params["down"][k - 1]
        h[k - 1] = silu(jnp.concatenate([h[k - 1], h_down], axis=-1) @ w + b)
    return h[1]


# ----------------------------------------------------------------------------
if __name__ == "__main__":
    N1 = 16            # number of n1 (atom) nodes
    IN_FEATURES = 16
    HIDDEN = 32
    OUT_FEATURES = 16
    MAX_LEVEL = 4

    key = jax.random.PRNGKey(0)
    key, kf, kp = jax.random.split(key, 3)
    feat = jax.random.normal(kf, (N1, IN_FEATURES), jnp.float32)
    params = init_params(kp, IN_FEATURES, OUT_FEATURES, HIDDEN, MAX_LEVEL)

    out = jax.block_until_ready(hpno_forward(feat, params, MAX_LEVEL))
    ref = jax.block_until_ready(hpno_reference(feat, params, MAX_LEVEL))

    assert out.shape == (N1, OUT_FEATURES), out.shape
    assert jnp.allclose(out, ref, atol=1e-4, rtol=1e-4), float(
        jnp.max(jnp.abs(out - ref)))

    print("KERNEL_OK")
</pallas_src>

<mosaic_0001>
module attributes {stable_mosaic.version = 11 : i64} {
  func.func @kernel(%arg0: memref<16x128xf32, #tpu.memory_space<vmem>>, %arg1: memref<256x128xf32, #tpu.memory_space<vmem>>, %arg2: memref<1x128xf32, #tpu.memory_space<vmem>>, %arg3: memref<256x128xf32, #tpu.memory_space<vmem>>, %arg4: memref<1x128xf32, #tpu.memory_space<vmem>>, %arg5: memref<256x128xf32, #tpu.memory_space<vmem>>, %arg6: memref<1x128xf32, #tpu.memory_space<vmem>>, %arg7: memref<256x128xf32, #tpu.memory_space<vmem>>, %arg8: memref<1x128xf32, #tpu.memory_space<vmem>>, %arg9: memref<256x128xf32, #tpu.memory_space<vmem>>, %arg10: memref<1x128xf32, #tpu.memory_space<vmem>>, %arg11: memref<256x128xf32, #tpu.memory_space<vmem>>, %arg12: memref<1x128xf32, #tpu.memory_space<vmem>>, %arg13: memref<16x128xf32, #tpu.memory_space<vmem>>, %arg14: memref<16x128xf32, #tpu.memory_space<vmem>>, %arg15: memref<16x128xf32, #tpu.memory_space<vmem>>, %arg16: memref<16x128xf32, #tpu.memory_space<vmem>>) attributes {dimension_semantics = [], scalar_prefetch = 0 : i64, scratch_operands = 3 : i64, tpu.core_type = #tpu.core_type<tc>} {
    %0 = tpu.iota {dimensions = array<i32: 0>} : vector<16x1xi32>
    %c0 = arith.constant 0 : index
    %c0_0 = arith.constant 0 : index
    %1 = vector.load %arg0[%c0, %c0_0] : memref<16x128xf32, #tpu.memory_space<vmem>>, vector<16x128xf32>
    %c15_i32 = arith.constant 15 : i32
    %2 = tpu.dynamic_rotate %1 by %c15_i32 dim 0 : vector<16x128xf32>, i32 -> vector<16x128xf32>
    %3 = tpu.concatenate %1, %2 in 1 : vector<16x128xf32>, vector<16x128xf32> -> vector<16x256xf32>
    %c0_1 = arith.constant 0 : index
    %c0_2 = arith.constant 0 : index
    %4 = vector.load %arg1[%c0_1, %c0_2] : memref<256x128xf32, #tpu.memory_space<vmem>>, vector<256x128xf32>
    %cst = arith.constant dense<0.000000e+00> : vector<16x128xf32>
    %5 = tpu.matmul %3, %4, %cst {dimension_numbers = #tpu.dot_dimension_numbers<[1], [0], [0], [1], [0, 0, 1, 1], [], []>} : vector<16x256xf32>, vector<256x128xf32>, vector<16x128xf32> -> vector<16x128xf32>
    %c0_3 = arith.constant 0 : index
    %c0_4 = arith.constant 0 : index
    %6 = vector.load %arg2[%c0_3, %c0_4] : memref<1x128xf32, #tpu.memory_space<vmem>>, vector<1x128xf32>
    %7 = vector.broadcast %6 : vector<1x128xf32> to vector<16x128xf32>
    %8 = arith.addf %5, %7 : vector<16x128xf32>
    %cst_5 = arith.constant 5.000000e-01 : f32
    %9 = vector.broadcast %cst_5 : f32 to vector<16x128xf32>
    %10 = arith.mulf %9, %8 : vector<16x128xf32>
    %11 = math.tanh %10 : vector<16x128xf32>
    %cst_6 = arith.constant 5.000000e-01 : f32
    %12 = vector.broadcast %cst_6 : f32 to vector<16x128xf32>
    %13 = arith.mulf %12, %11 : vector<16x128xf32>
    %cst_7 = arith.constant 5.000000e-01 : f32
    %14 = vector.broadcast %cst_7 : f32 to vector<16x128xf32>
    %15 = arith.addf %13, %14 : vector<16x128xf32>
    %16 = arith.mulf %8, %15 : vector<16x128xf32>
    %c15_i32_8 = arith.constant 15 : i32
    %17 = vector.broadcast %c15_i32_8 : i32 to vector<16x1xi32>
    %18 = arith.cmpi slt, %0, %17 : vector<16x1xi32>
    %cst_9 = arith.constant 0.000000e+00 : f32
    %19 = vector.shape_cast %18 : vector<16x1xi1> to vector<16x1xi1>
    %20 = vector.broadcast %19 : vector<16x1xi1> to vector<16x128xi1>
    %21 = vector.broadcast %cst_9 : f32 to vector<16x128xf32>
    %22 = arith.select %20, %16, %21 : vector<16x128xi1>, vector<16x128xf32>
    %c0_10 = arith.constant 0 : index
    %c0_11 = arith.constant 0 : index
    %23 = vector.load %arg14[%c0_10, %c0_11] : memref<16x128xf32, #tpu.memory_space<vmem>>, vector<16x128xf32>
    tpu.vector_store %arg14[%c0_10, %c0_11], %22 {strides = array<i32>} : memref<16x128xf32, #tpu.memory_space<vmem>>, vector<16x128xf32>,
    %c0_12 = arith.constant 0 : index
    %c0_13 = arith.constant 0 : index
    %24 = vector.load %arg14[%c0_12, %c0_13] : memref<16x128xf32, #tpu.memory_space<vmem>>, vector<16x128xf32>
    %c15_i32_14 = arith.constant 15 : i32
    %25 = tpu.dynamic_rotate %24 by %c15_i32_14 dim 0 : vector<16x128xf32>, i32 -> vector<16x128xf32>
    %26 = tpu.concatenate %24, %25 in 1 : vector<16x128xf32>, vector<16x128xf32> -> vector<16x256xf32>
    %c0_15 = arith.constant 0 : index
    %c0_16 = arith.constant 0 : index
    %27 = vector.load %arg3[%c0_15, %c0_16] : memref<256x128xf32, #tpu.memory_space<vmem>>, vector<256x128xf32>
    %cst_17 = arith.constant dense<0.000000e+00> : vector<16x128xf32>
    %28 = tpu.matmul %26, %27, %cst_17 {dimension_numbers = #tpu.dot_dimension_numbers<[1], [0], [0], [1], [0, 0, 1, 1], [], []>} : vector<16x256xf32>, vector<256x128xf32>, vector<16x128xf32> -> vector<16x128xf32>
    %c0_18 = arith.constant 0 : index
    %c0_19 = arith.constant 0 : index
    %29 = vector.load %arg4[%c0_18, %c0_19] : memref<1x128xf32, #tpu.memory_space<vmem>>, vector<1x128xf32>
    %30 = vector.broadcast %29 : vector<1x128xf32> to vector<16x128xf32>
    %31 = arith.addf %28, %30 : vector<16x128xf32>
    %cst_20 = arith.constant 5.000000e-01 : f32
    %32 = vector.broadcast %cst_20 : f32 to vector<16x128xf32>
    %33 = arith.mulf %32, %31 : vector<16x128xf32>
    %34 = math.tanh %33 : vector<16x128xf32>
    %cst_21 = arith.constant 5.000000e-01 : f32
    %35 = vector.broadcast %cst_21 : f32 to vector<16x128xf32>
    %36 = arith.mulf %35, %34 : vector<16x128xf32>
    %cst_22 = arith.constant 5.000000e-01 : f32
    %37 = vector.broadcast %cst_22 : f32 to vector<16x128xf32>
    %38 = arith.addf %36, %37 : vector<16x128xf32>
    %39 = arith.mulf %31, %38 : vector<16x128xf32>
    %c14_i32 = arith.constant 14 : i32
    %40 = vector.broadcast %c14_i32 : i32 to vector<16x1xi32>
    %41 = arith.cmpi slt, %0, %40 : vector<16x1xi32>
    %cst_23 = arith.constant 0.000000e+00 : f32
    %42 = vector.shape_cast %41 : vector<16x1xi1> to vector<16x1xi1>
    %43 = vector.broadcast %42 : vector<16x1xi1> to vector<16x128xi1>
    %44 = vector.broadcast %cst_23 : f32 to vector<16x128xf32>
    %45 = arith.select %43, %39, %44 : vector<16x128xi1>, vector<16x128xf32>
    %c0_24 = arith.constant 0 : index
    %c0_25 = arith.constant 0 : index
    %46 = vector.load %arg15[%c0_24, %c0_25] : memref<16x128xf32, #tpu.memory_space<vmem>>, vector<16x128xf32>
    tpu.vector_store %arg15[%c0_24, %c0_25], %45 {strides = array<i32>} : memref<16x128xf32, #tpu.memory_space<vmem>>, vector<16x128xf32>,
    %c0_26 = arith.constant 0 : index
    %c0_27 = arith.constant 0 : index
    %47 = vector.load %arg15[%c0_26, %c0_27] : memref<16x128xf32, #tpu.memory_space<vmem>>, vector<16x128xf32>
    %c15_i32_28 = arith.constant 15 : i32
    %48 = tpu.dynamic_rotate %47 by %c15_i32_28 dim 0 : vector<16x128xf32>, i32 -> vector<16x128xf32>
    %49 = tpu.concatenate %47, %48 in 1 : vector<16x128xf32>, vector<16x128xf32> -> vector<16x256xf32>
    %c0_29 = arith.constant 0 : index
    %c0_30 = arith.constant 0 : index
    %50 = vector.load %arg5[%c0_29, %c0_30] : memref<256x128xf32, #tpu.memory_space<vmem>>, vector<256x128xf32>
    %cst_31 = arith.constant dense<0.000000e+00> : vector<16x128xf32>
    %51 = tpu.matmul %49, %50, %cst_31 {dimension_numbers = #tpu.dot_dimension_numbers<[1], [0], [0], [1], [0, 0, 1, 1], [], []>} : vector<16x256xf32>, vector<256x128xf32>, vector<16x128xf32> -> vector<16x128xf32>
    %c0_32 = arith.constant 0 : index
    %c0_33 = arith.constant 0 : index
    %52 = vector.load %arg6[%c0_32, %c0_33] : memref<1x128xf32, #tpu.memory_space<vmem>>, vector<1x128xf32>
    %53 = vector.broadcast %52 : vector<1x128xf32> to vector<16x128xf32>
    %54 = arith.addf %51, %53 : vector<16x128xf32>
    %cst_34 = arith.constant 5.000000e-01 : f32
    %55 = vector.broadcast %cst_34 : f32 to vector<16x128xf32>
    %56 = arith.mulf %55, %54 : vector<16x128xf32>
    %57 = math.tanh %56 : vector<16x128xf32>
    %cst_35 = arith.constant 5.000000e-01 : f32
    %58 = vector.broadcast %cst_35 : f32 to vector<16x128xf32>
    %59 = arith.mulf %58, %57 : vector<16x128xf32>
    %cst_36 = arith.constant 5.000000e-01 : f32
    %60 = vector.broadcast %cst_36 : f32 to vector<16x128xf32>
    %61 = arith.addf %59, %60 : vector<16x128xf32>
    %62 = arith.mulf %54, %61 : vector<16x128xf32>
    %c13_i32 = arith.constant 13 : i32
    %63 = vector.broadcast %c13_i32 : i32 to vector<16x1xi32>
    %64 = arith.cmpi slt, %0, %63 : vector<16x1xi32>
    %cst_37 = arith.constant 0.000000e+00 : f32
    %65 = vector.shape_cast %64 : vector<16x1xi1> to vector<16x1xi1>
    %66 = vector.broadcast %65 : vector<16x1xi1> to vector<16x128xi1>
    %67 = vector.broadcast %cst_37 : f32 to vector<16x128xf32>
    %68 = arith.select %66, %62, %67 : vector<16x128xi1>, vector<16x128xf32>
    %c0_38 = arith.constant 0 : index
    %c0_39 = arith.constant 0 : index
    %69 = vector.load %arg16[%c0_38, %c0_39] : memref<16x128xf32, #tpu.memory_space<vmem>>, vector<16x128xf32>
    tpu.vector_store %arg16[%c0_38, %c0_39], %68 {strides = array<i32>} : memref<16x128xf32, #tpu.memory_space<vmem>>, vector<16x128xf32>,
    %c0_40 = arith.constant 0 : index
    %c0_41 = arith.constant 0 : index
    %70 = vector.load %arg16[%c0_40, %c0_41] : memref<16x128xf32, #tpu.memory_space<vmem>>, vector<16x128xf32>
    %c1_i32 = arith.constant 1 : i32
    %71 = tpu.dynamic_rotate %70 by %c1_i32 dim 0 : vector<16x128xf32>, i32 -> vector<16x128xf32>
    %72 = arith.addf %70, %71 : vector<16x128xf32>
    %c0_42 = arith.constant 0 : index
    %c0_43 = arith.constant 0 : index
    %73 = vector.load %arg15[%c0_42, %c0_43] : memref<16x128xf32, #tpu.memory_space<vmem>>, vector<16x128xf32>
    %74 = tpu.concatenate %73, %72 in 1 : vector<16x128xf32>, vector<16x128xf32> -> vector<16x256xf32>
    %c0_44 = arith.constant 0 : index
    %c0_45 = arith.constant 0 : index
    %75 = vector.load %arg11[%c0_44, %c0_45] : memref<256x128xf32, #tpu.memory_space<vmem>>, vector<256x128xf32>
    %cst_46 = arith.constant dense<0.000000e+00> : vector<16x128xf32>
    %76 = tpu.matmul %74, %75, %cst_46 {dimension_numbers = #tpu.dot_dimension_numbers<[1], [0], [0], [1], [0, 0, 1, 1], [], []>} : vector<16x256xf32>, vector<256x128xf32>, vector<16x128xf32> -> vector<16x128xf32>
    %c0_47 = arith.constant 0 : index
    %c0_48 = arith.constant 0 : index
    %77 = vector.load %arg12[%c0_47, %c0_48] : memref<1x128xf32, #tpu.memory_space<vmem>>, vector<1x128xf32>
    %78 = vector.broadcast %77 : vector<1x128xf32> to vector<16x128xf32>
    %79 = arith.addf %76, %78 : vector<16x128xf32>
    %cst_49 = arith.constant 5.000000e-01 : f32
    %80 = vector.broadcast %cst_49 : f32 to vector<16x128xf32>
    %81 = arith.mulf %80, %79 : vector<16x128xf32>
    %82 = math.tanh %81 : vector<16x128xf32>
    %cst_50 = arith.constant 5.000000e-01 : f32
    %83 = vector.broadcast %cst_50 : f32 to vector<16x128xf32>
    %84 = arith.mulf %83, %82 : vector<16x128xf32>
    %cst_51 = arith.constant 5.000000e-01 : f32
    %85 = vector.broadcast %cst_51 : f32 to vector<16x128xf32>
    %86 = arith.addf %84, %85 : vector<16x128xf32>
    %87 = arith.mulf %79, %86 : vector<16x128xf32>
    %c14_i32_52 = arith.constant 14 : i32
    %88 = vector.broadcast %c14_i32_52 : i32 to vector<16x1xi32>
    %89 = arith.cmpi slt, %0, %88 : vector<16x1xi32>
    %cst_53 = arith.constant 0.000000e+00 : f32
    %90 = vector.shape_cast %89 : vector<16x1xi1> to vector<16x1xi1>
    %91 = vector.broadcast %90 : vector<16x1xi1> to vector<16x128xi1>
    %92 = vector.broadcast %cst_53 : f32 to vector<16x128xf32>
    %93 = arith.select %91, %87, %92 : vector<16x128xi1>, vector<16x128xf32>
    %c0_54 = arith.constant 0 : index
    %c0_55 = arith.constant 0 : index
    %94 = vector.load %arg15[%c0_54, %c0_55] : memref<16x128xf32, #tpu.memory_space<vmem>>, vector<16x128xf32>
    tpu.vector_store %arg15[%c0_54, %c0_55], %93 {strides = array<i32>} : memref<16x128xf32, #tpu.memory_space<vmem>>, vector<16x128xf32>,
    %c0_56 = arith.constant 0 : index
    %c0_57 = arith.constant 0 : index
    %95 = vector.load %arg15[%c0_56, %c0_57] : memref<16x128xf32, #tpu.memory_space<vmem>>, vector<16x128xf32>
    %c1_i32_58 = arith.constant 1 : i32
    %96 = tpu.dynamic_rotate %95 by %c1_i32_58 dim 0 : vector<16x128xf32>, i32 -> vector<16x128xf32>
    %97 = arith.addf %95, %96 : vector<16x128xf32>
    %c0_59 = arith.constant 0 : index
    %c0_60 = arith.constant 0 : index
    %98 = vector.load %arg14[%c0_59, %c0_60] : memref<16x128xf32, #tpu.memory_space<vmem>>, vector<16x128xf32>
    %99 = tpu.concatenate %98, %97 in 1 : vector<16x128xf32>, vector<16x128xf32> -> vector<16x256xf32>
    %c0_61 = arith.constant 0 : index
    %c0_62 = arith.constant 0 : index
    %100 = vector.load %arg9[%c0_61, %c0_62] : memref<256x128xf32, #tpu.memory_space<vmem>>, vector<256x128xf32>
    %cst_63 = arith.constant dense<0.000000e+00> : vector<16x128xf32>
    %101 = tpu.matmul %99, %100, %cst_63 {dimension_numbers = #tpu.dot_dimension_numbers<[1], [0], [0], [1], [0, 0, 1, 1], [], []>} : vector<16x256xf32>, vector<256x128xf32>, vector<16x128xf32> -> vector<16x128xf32>
    %c0_64 = arith.constant 0 : index
    %c0_65 = arith.constant 0 : index
    %102 = vector.load %arg10[%c0_64, %c0_65] : memref<1x128xf32, #tpu.memory_space<vmem>>, vector<1x128xf32>
    %103 = vector.broadcast %102 : vector<1x128xf32> to vector<16x128xf32>
    %104 = arith.addf %101, %103 : vector<16x128xf32>
    %cst_66 = arith.constant 5.000000e-01 : f32
    %105 = vector.broadcast %cst_66 : f32 to vector<16x128xf32>
    %106 = arith.mulf %105, %104 : vector<16x128xf32>
    %107 = math.tanh %106 : vector<16x128xf32>
    %cst_67 = arith.constant 5.000000e-01 : f32
    %108 = vector.broadcast %cst_67 : f32 to vector<16x128xf32>
    %109 = arith.mulf %108, %107 : vector<16x128xf32>
    %cst_68 = arith.constant 5.000000e-01 : f32
    %110 = vector.broadcast %cst_68 : f32 to vector<16x128xf32>
    %111 = arith.addf %109, %110 : vector<16x128xf32>
    %112 = arith.mulf %104, %111 : vector<16x128xf32>
    %c15_i32_69 = arith.constant 15 : i32
    %113 = vector.broadcast %c15_i32_69 : i32 to vector<16x1xi32>
    %114 = arith.cmpi slt, %0, %113 : vector<16x1xi32>
    %cst_70 = arith.constant 0.000000e+00 : f32
    %115 = vector.shape_cast %114 : vector<16x1xi1> to vector<16x1xi1>
    %116 = vector.broadcast %115 : vector<16x1xi1> to vector<16x128xi1>
    %117 = vector.broadcast %cst_70 : f32 to vector<16x128xf32>
    %118 = arith.select %116, %112, %117 : vector<16x128xi1>, vector<16x128xf32>
    %c0_71 = arith.constant 0 : index
    %c0_72 = arith.constant 0 : index
    %119 = vector.load %arg14[%c0_71, %c0_72] : memref<16x128xf32, #tpu.memory_space<vmem>>, vector<16x128xf32>
    tpu.vector_store %arg14[%c0_71, %c0_72], %118 {strides = array<i32>} : memref<16x128xf32, #tpu.memory_space<vmem>>, vector<16x128xf32>,
    %c0_73 = arith.constant 0 : index
    %c0_74 = arith.constant 0 : index
    %120 = vector.load %arg14[%c0_73, %c0_74] : memref<16x128xf32, #tpu.memory_space<vmem>>, vector<16x128xf32>
    %c1_i32_75 = arith.constant 1 : i32
    %121 = tpu.dynamic_rotate %120 by %c1_i32_75 dim 0 : vector<16x128xf32>, i32 -> vector<16x128xf32>
    %122 = arith.addf %120, %121 : vector<16x128xf32>
    %c0_76 = arith.constant 0 : index
    %c0_77 = arith.constant 0 : index
    %123 = vector.load %arg0[%c0_76, %c0_77] : memref<16x128xf32, #tpu.memory_space<vmem>>, vector<16x128xf32>
    %124 = tpu.concatenate %123, %122 in 1 : vector<16x128xf32>, vector<16x128xf32> -> vector<16x256xf32>
    %c0_78 = arith.constant 0 : index
    %c0_79 = arith.constant 0 : index
    %125 = vector.load %arg7[%c0_78, %c0_79] : memref<256x128xf32, #tpu.memory_space<vmem>>, vector<256x128xf32>
    %cst_80 = arith.constant dense<0.000000e+00> : vector<16x128xf32>
    %126 = tpu.matmul %124, %125, %cst_80 {dimension_numbers = #tpu.dot_dimension_numbers<[1], [0], [0], [1], [0, 0, 1, 1], [], []>} : vector<16x256xf32>, vector<256x128xf32>, vector<16x128xf32> -> vector<16x128xf32>
    %c0_81 = arith.constant 0 : index
    %c0_82 = arith.constant 0 : index
    %127 = vector.load %arg8[%c0_81, %c0_82] : memref<1x128xf32, #tpu.memory_space<vmem>>, vector<1x128xf32>
    %128 = vector.broadcast %127 : vector<1x128xf32> to vector<16x128xf32>
    %129 = arith.addf %126, %128 : vector<16x128xf32>
    %cst_83 = arith.constant 5.000000e-01 : f32
    %130 = vector.broadcast %cst_83 : f32 to vector<16x128xf32>
    %131 = arith.mulf %130, %129 : vector<16x128xf32>
    %132 = math.tanh %131 : vector<16x128xf32>
    %cst_84 = arith.constant 5.000000e-01 : f32
    %133 = vector.broadcast %cst_84 : f32 to vector<16x128xf32>
    %134 = arith.mulf %133, %132 : vector<16x128xf32>
    %cst_85 = arith.constant 5.000000e-01 : f32
    %135 = vector.broadcast %cst_85 : f32 to vector<16x128xf32>
    %136 = arith.addf %134, %135 : vector<16x128xf32>
    %137 = arith.mulf %129, %136 : vector<16x128xf32>
    %c0_86 = arith.constant 0 : index
    %c0_87 = arith.constant 0 : index
    %138 = vector.load %arg13[%c0_86, %c0_87] : memref<16x128xf32, #tpu.memory_space<vmem>>, vector<16x128xf32>
    tpu.vector_store %arg13[%c0_86, %c0_87], %137 {strides = array<i32>} : memref<16x128xf32, #tpu.memory_space<vmem>>, vector<16x128xf32>,
    return
  }
}

</mosaic_0001>

<bundles_post_ra>
// kernel: tpu_custom_call.1
= control target key start
LH: loop header
LB: loop body
LE: loop exit
PB: predicated region body
PF: predicated region fallthrough
CT: control target
= control target key end

     0   :  { %18 = vsyncpa [#allocation6], 0  ;;  %s1958_s0 = inlined_call_operand.hbm [shape: f32[16,128], index: 0, kind: input, shape index: {}]   ;;  %s1959_s1 = inlined_call_operand.hbm [shape: f32[256,128], index: 1, kind: input, shape index: {}]   ;;  %s1960_s2 = inlined_call_operand.vmem [shape: f32[1,128], index: 2, kind: input, shape index: {}]   ;;  %s1961_s3 = inlined_call_operand.hbm [shape: f32[256,128], index: 3, kind: input, shape index: {}]   ;;  %s1962_s4 = inlined_call_operand.vmem [shape: f32[1,128], index: 4, kind: input, shape index: {}]   ;;  %s1963_s5 = inlined_call_operand.hbm [shape: f32[256,128], index: 5, kind: input, shape index: {}]   ;;  %s1964_s6 = inlined_call_operand.vmem [shape: f32[1,128], index: 6, kind: input, shape index: {}]   ;;  %s1965_s7 = inlined_call_operand.hbm [shape: f32[256,128], index: 7, kind: input, shape index: {}]   ;;  %s1966_s8 = inlined_call_operand.vmem [shape: f32[1,128], index: 8, kind: input, shape index: {}]   ;;  %s1967_s9 = inlined_call_operand.hbm [shape: f32[256,128], index: 9, kind: input, shape index: {}]   ;;  %s1968_s10 = inlined_call_operand.vmem [shape: f32[1,128], index: 10, kind: input, shape index: {}]   ;;  %s1969_s11 = inlined_call_operand.hbm [shape: f32[256,128], index: 11, kind: input, shape index: {}]   ;;  %s1970_s12 = inlined_call_operand.vmem [shape: f32[1,128], index: 12, kind: input, shape index: {}]   ;;  %s1971_s13 = inlined_call_operand.hbm [shape: f32[16,128], index: 13, kind: output, shape index: {}]  }
   0x1   :  { %19 = vsyncpa [#allocation9], 0 }
   0x2   :  { %20 = vsyncpa [#allocation12], 0 }
   0x3   :  { %21 = vsyncpa [#allocation15], 0 }
   0x4   :  { %22 = vsyncpa [#allocation7], 0  ;;  %s1649_s25 = smov [#allocation8]   ;;  %s1650_s27 = smov [#allocation11]  }
   0x5   :  { %s40_s26 = sshll.u32 %s1649_s25, 4  ;;  %s68_s28 = sshll.u32 %s1650_s27, 4  ;;  %s41_s26 = int_to_ptr.vmem [resolvable:$true] %s40_s26  ;;  %s1729_s28 = int_to_ptr.vmem [resolvable:$true] %s68_s28 }
   0x6   :  { %s1463_s14 = scalar_lea.hbm %s1959_s1, 4096 }
   0x7   :  { %p1464_p0 = scmp.ne.s32.totalorder %s1959_s1, %s1463_s14  ;;  %p1467_p1 = scmp.lt.u32.totalorder %s1463_s14, %s1959_s1 }
   0x9   :  { %p1469_p2 = pnand %p1467_p1, %p1464_p0 }
   0xb   :  { %1472 = shalt.err (!%p1469_p2)
}
   0xc   :  { %s1473_s19 = scalar_lea.vmem %s41_s26, 4096  ;;  %p1478_p4 = scmp.lt.s32.totalorder %s41_s26, %s41_s26 }
   0xd   :  { %p1474_p3 = scmp.ne.s32.totalorder %s41_s26, %s1473_s19  ;;  %p1479_p5 = scmp.lt.s32.totalorder %s1473_s19, %s1473_s19 }
   0xf   :  { %p1480_p6 = por %p1479_p5, %p1478_p4 }
  0x11   :  { %p1481_p7 = pnand %p1480_p6, %p1474_p3 }
  0x13   :  { %1484 = shalt.err (!%p1481_p7)
}
  0x14   :  { %s1651_s20 = smov 128   ;;  %s1652_s21 = smov 8  }
  0x15   :  { %46 = dma.hbm_to_vmem [thread:$0]  %s1959_s1, 4096, %s41_s26, [#allocation9], %s1651_s20, %s1651_s20, %s1652_s21  }
  0x16   :  { %s1485_s27 = scalar_lea.hbm %s1963_s5, 4096 }
  0x17   :  { %p1486_p8 = scmp.ne.s32.totalorder %s1963_s5, %s1485_s27  ;;  %p1489_p9 = scmp.lt.u32.totalorder %s1485_s27, %s1963_s5 }
  0x19   :  { %p1491_p10 = pnand %p1489_p9, %p1486_p8 }
  0x1b   :  { %1494 = shalt.err (!%p1491_p10)
}
  0x1c   :  { %s1495_s16 = scalar_lea.vmem %s1729_s28, 4096  ;;  %p1500_p12 = scmp.lt.s32.totalorder %s1729_s28, %s1729_s28 }
  0x1d   :  { %p1496_p11 = scmp.ne.s32.totalorder %s1729_s28, %s1495_s16  ;;  %p1501_p13 = scmp.lt.s32.totalorder %s1495_s16, %s1495_s16 }
  0x1f   :  { %p1502_p0 = por %p1501_p13, %p1500_p12 }
  0x21   :  { %p1503_p1 = pnand %p1502_p0, %p1496_p11 }
  0x23   :  { %1506 = shalt.err (!%p1503_p1)
}
  0x24   :  { %74 = dma.hbm_to_vmem [thread:$0]  %s1963_s5, 4096, %s1729_s28, [#allocation12], %s1651_s20, %s1651_s20, %s1652_s21  }
  0x25   :  { %s1653_s17 = smov [#allocation14]   ;;  %s1654_s19 = smov [#allocation5]  }
  0x26   :  { %s96_s18 = sshll.u32 %s1653_s17, 4  ;;  %s28_s22 = sshll.u32 %s1654_s19, 4  ;;  %s97_s18 = int_to_ptr.vmem [resolvable:$true] %s96_s18  ;;  %s1766_s22 = int_to_ptr.vmem [resolvable:$true] %s28_s22 }
  0x27   :  { %s1507_s25 = scalar_lea.hbm %s1967_s9, 4096 }
  0x28   :  { %p1508_p2 = scmp.ne.s32.totalorder %s1967_s9, %s1507_s25  ;;  %p1511_p3 = scmp.lt.u32.totalorder %s1507_s25, %s1967_s9 }
  0x2a   :  { %p1513_p4 = pnand %p1511_p3, %p1508_p2 }
  0x2c   :  { %1516 = shalt.err (!%p1513_p4)
}
  0x2d   :  { %s1517_s5 = scalar_lea.vmem %s97_s18, 4096  ;;  %p1522_p6 = scmp.lt.s32.totalorder %s97_s18, %s97_s18 }
  0x2e   :  { %p1518_p5 = scmp.ne.s32.totalorder %s97_s18, %s1517_s5  ;;  %p1523_p7 = scmp.lt.s32.totalorder %s1517_s5, %s1517_s5 }
  0x30   :  { %p1524_p8 = por %p1523_p7, %p1522_p6 }
  0x32   :  { %p1525_p9 = pnand %p1524_p8, %p1518_p5 }
  0x34   :  { %1528 = shalt.err (!%p1525_p9)
}
  0x35   :  { %102 = dma.hbm_to_vmem [thread:$0]  %s1967_s9, 4096, %s97_s18, [#allocation15], %s1651_s20, %s1651_s20, %s1652_s21  }
  0x36   :  { %s1529_s26 = scalar_lea.hbm %s1958_s0, 256 }
  0x37   :  { %p1530_p10 = scmp.ne.s32.totalorder %s1958_s0, %s1529_s26  ;;  %p1533_p11 = scmp.lt.u32.totalorder %s1529_s26, %s1958_s0 }
  0x39   :  { %p1535_p12 = pnand %p1533_p11, %p1530_p10 }
  0x3b   :  { %1538 = shalt.err (!%p1535_p12)
}
  0x3c   :  { %s1539_s25 = scalar_lea.vmem %s1766_s22, 256  ;;  %p1544_p0 = scmp.lt.s32.totalorder %s1766_s22, %s1766_s22 }
  0x3d   :  { %p1540_p13 = scmp.ne.s32.totalorder %s1766_s22, %s1539_s25  ;;  %p1545_p1 = scmp.lt.s32.totalorder %s1539_s25, %s1539_s25 }
  0x3f   :  { %p1546_p2 = por %p1545_p1, %p1544_p0 }
  0x41   :  { %p1547_p3 = pnand %p1546_p2, %p1540_p13 }
  0x43   :  { %1550 = shalt.err (!%p1547_p3)
}
  0x44   :  { %34 = dma.hbm_to_vmem [thread:$0]  %s1958_s0, 256, %s1766_s22, [#allocation6], %s1651_s20, %s1651_s20, %s1652_s21  }
  0x45   :  { %s1655_s27 = smov [#allocation10]   ;;  %s1656_s30 = smov [#allocation13]  }
  0x46   :  { %s54_s29 = sshll.u32 %s1655_s27, 4  ;;  %s82_s14 = sshll.u32 %s1656_s30, 4  ;;  %s55_s29 = int_to_ptr.vmem [resolvable:$true] %s54_s29  ;;  %s1803_s14 = int_to_ptr.vmem [resolvable:$true] %s82_s14 }
  0x47   :  { %s1551_s15 = scalar_lea.hbm %s1961_s3, 4096 }
  0x48   :  { %p1552_p4 = scmp.ne.s32.totalorder %s1961_s3, %s1551_s15  ;;  %p1555_p5 = scmp.lt.u32.totalorder %s1551_s15, %s1961_s3 }
  0x4a   :  { %p1557_p6 = pnand %p1555_p5, %p1552_p4 }
  0x4c   :  { %1560 = shalt.err (!%p1557_p6)
}
  0x4d   :  { %s1561_s0 = scalar_lea.vmem %s55_s29, 4096  ;;  %p1566_p8 = scmp.lt.s32.totalorder %s55_s29, %s55_s29 }
  0x4e   :  { %p1562_p7 = scmp.ne.s32.totalorder %s55_s29, %s1561_s0  ;;  %p1567_p9 = scmp.lt.s32.totalorder %s1561_s0, %s1561_s0 }
  0x50   :  { %p1568_p10 = por %p1567_p9, %p1566_p8 }
  0x52   :  { %p1569_p11 = pnand %p1568_p10, %p1562_p7 }
  0x54   :  { %1572 = shalt.err (!%p1569_p11)
}
  0x55   :  { %60 = dma.hbm_to_vmem [thread:$0]  %s1961_s3, 4096, %s55_s29, [#allocation9], %s1651_s20, %s1651_s20, %s1652_s21  }
  0x56   :  { %s1573_s25 = scalar_lea.hbm %s1965_s7, 4096 }
  0x57   :  { %p1574_p12 = scmp.ne.s32.totalorder %s1965_s7, %s1573_s25  ;;  %p1577_p13 = scmp.lt.u32.totalorder %s1573_s25, %s1965_s7 }
  0x59   :  { %p1579_p0 = pnand %p1577_p13, %p1574_p12 }
  0x5b   :  { %1582 = shalt.err (!%p1579_p0)
}
  0x5c   :  { %s1583_s5 = scalar_lea.vmem %s1803_s14, 4096  ;;  %p1588_p2 = scmp.lt.s32.totalorder %s1803_s14, %s1803_s14 }
  0x5d   :  { %p1584_p1 = scmp.ne.s32.totalorder %s1803_s14, %s1583_s5  ;;  %p1589_p3 = scmp.lt.s32.totalorder %s1583_s5, %s1583_s5 }
  0x5f   :  { %p1590_p4 = por %p1589_p3, %p1588_p2 }
  0x61   :  { %p1591_p5 = pnand %p1590_p4, %p1584_p1 }
  0x63   :  { %1594 = shalt.err (!%p1591_p5)
}
  0x64   :  { %88 = dma.hbm_to_vmem [thread:$0]  %s1965_s7, 4096, %s1803_s14, [#allocation12], %s1651_s20, %s1651_s20, %s1652_s21  }
  0x65   :  { %s1657_s28 = smov [#allocation16]   ;;  %s1595_s26 = scalar_lea.hbm %s1969_s11, 4096 }
  0x66   :  { %s110_s15 = sshll.u32 %s1657_s28, 4  ;;  %p1596_p6 = scmp.ne.s32.totalorder %s1969_s11, %s1595_s26  ;;  %s111_s15 = int_to_ptr.vmem [resolvable:$true] %s110_s15 }
  0x67   :  { %p1599_p7 = scmp.lt.u32.totalorder %s1595_s26, %s1969_s11 }
  0x69   :  { %p1601_p8 = pnand %p1599_p7, %p1596_p6 }
  0x6b   :  { %1604 = shalt.err (!%p1601_p8)
}
  0x6c   :  { %s1605_s23 = scalar_lea.vmem %s111_s15, 4096  ;;  %p1610_p10 = scmp.lt.s32.totalorder %s111_s15, %s111_s15 }
  0x6d   :  { %p1606_p9 = scmp.ne.s32.totalorder %s111_s15, %s1605_s23  ;;  %p1611_p11 = scmp.lt.s32.totalorder %s1605_s23, %s1605_s23 }
  0x6f   :  { %p1612_p12 = por %p1611_p11, %p1610_p10 }
  0x71   :  { %p1613_p13 = pnand %p1612_p12, %p1606_p9 }
  0x73   :  { %1616 = shalt.err (!%p1613_p13)
}
  0x74   :  { %116 = dma.hbm_to_vmem [thread:$0]  %s1969_s11, 4096, %s111_s15, [#allocation15], %s1651_s20, %s1651_s20, %s1652_s21  }
  0x75   :  { %1639 = dma.done.wait [#allocation6], 256  }
  0x76   :  { %1640 = vsyncadd [#allocation6], 4294967040 }
  0x77   :  { %1641 = dma.done.wait [#allocation9], 8192  }
  0x78   :  { %1642 = vsyncadd [#allocation9], 4294959104 }
  0x79   :  { %1643 = dma.done.wait [#allocation12], 8192  }
  0x7a   :  { %1644 = vsyncadd [#allocation12], 4294959104 }
  0x7b   :  { %1645 = dma.done.wait [#allocation15], 8192  }
  0x7c   :  { %1646 = vsyncadd [#allocation15], 4294959104  ;;  %v166_v0 = vld [vmem:[#allocation8 + $0x80] sm:$0xff]  ;;  %v167_v1 = vld [vmem:[#allocation8 + $0x88] sm:$0xff]  ;;  %v140_v13 = vlaneseq  ;;  %s1658_s5 = smov [#allocation17]  }
  0x7d   :  { %v150_v2 = vld [vmem:[#allocation8] sm:$0xff]  ;;  %v1235_v3 = vpack.c.bf16 %v167_v1, %v166_v0  ;;  %v151_v4 = vld [vmem:[#allocation8 + $0x8] sm:$0xff]  ;;  %v168_v5 = vld [vmem:[#allocation8 + $0x90] sm:$0xff]  ;;  %s982_s3 = sshll.u32 %s1658_s5, 4  ;;  %s983_s3 = int_to_ptr.vmem [resolvable:$true] %s982_s3 }
  0x7e   :  { %v169_v6 = vld [vmem:[#allocation8 + $0x98] sm:$0xff]  ;;  %v1237_v7 = vpack.c.bf16 %v151_v4, %v150_v2  ;;  %v152_v9 = vld [vmem:[#allocation8 + $0x10] sm:$0xff]  ;;  %v170_v11 = vld [vmem:[#allocation8 + $0xa0] sm:$0xff]  ;;  %v1855_v20 = vshrl.u32 %v140_v13, 7  ;;  %p1622_p1 = scmp.lt.s32.totalorder %s983_s3, %s983_s3 }
  0x7f   :  { %v1239_v8 = vpack.c.bf16 %v169_v6, %v168_v5  ;;  %v153_v10 = vld [vmem:[#allocation8 + $0x18] sm:$0xff]  ;;  %1236 = vmatprep.subr.bf16.mxu0 %v1235_v3  ;;  %v171_v12 = vld [vmem:[#allocation8 + $0xa8] sm:$0xff]  ;;  %v154_v16 = vld [vmem:[#allocation8 + $0x20] sm:$0xff] }
  0x80   :  { %1238 = vmatpush3.bf16.msra.mxu0 %v1237_v7  ;;  %v1241_v14 = vpack.c.bf16 %v153_v10, %v152_v9  ;;  %v1243_v15 = vpack.c.bf16 %v171_v12, %v170_v11  ;;  %v155_v17 = vld [vmem:[#allocation8 + $0x28] sm:$0xff]  ;;  %v172_v18 = vld [vmem:[#allocation8 + $0xb0] sm:$0xff]  ;;  %v173_v19 = vld [vmem:[#allocation8 + $0xb8] sm:$0xff]  ;;  %vm147_vm0 = vcmp.lt.s32.totalorder %v1855_v20, 7  ;;  %vm568_vm4 = vcmp.lt.s32.totalorder %v1855_v20, 1 }
  0x81   :  { %1240 = vmatprep.subr.bf16.mxu0 %v1239_v8  ;;  %v1245_v21 = vpack.c.bf16 %v155_v17, %v154_v16  ;;  %v1247_v22 = vpack.c.bf16 %v173_v19, %v172_v18  ;;  %v156_v23 = vld [vmem:[#allocation8 + $0x30] sm:$0xff]  ;;  %v157_v24 = vld [vmem:[#allocation8 + $0x38] sm:$0xff]  ;;  %v174_v25 = vld [vmem:[#allocation8 + $0xc0] sm:$0xff] }
  0x82   :  { %v175_v26 = vld [vmem:[#allocation8 + $0xc8] sm:$0xff]  ;;  %v143_v27 = vld [vmem:[#allocation5] sm:$0xff]  ;;  %v144_v28 = vld [vmem:[#allocation5 + $0x8] sm:$0xff]  ;;  %v1249_v30 = vpack.c.bf16 %v157_v24, %v156_v23 }
  0x83   :  { %v145_v29 = vrot.slane %v143_v27, 1  ;;  %v146_v31 = vrot.slane %v144_v28, 1  ;;  %v1251_v32 = vpack.c.bf16 %v175_v26, %v174_v25  ;;  %v158_v33 = vld [vmem:[#allocation8 + $0x40] sm:$0xff]  ;;  %v159_v34 = vld [vmem:[#allocation8 + $0x48] sm:$0xff]  ;;  %v176_v35 = vld [vmem:[#allocation8 + $0xd0] sm:$0xff] }
  0x84   :  { %1242 = vmatpush3.bf16.msra.mxu0 %v1241_v14  ;;  %v177_v36 = vld [vmem:[#allocation8 + $0xd8] sm:$0xff]  ;;  %v1253_v38 = vpack.c.bf16 %v159_v34, %v158_v33  ;;  %v160_v40 = vld [vmem:[#allocation8 + $0x50] sm:$0xff]  ;;  %v178_v42 = vld [vmem:[#allocation8 + $0xe0] sm:$0xff] }
  0x85   :  { %1244 = vmatprep.subr.bf16.mxu0 %v1243_v15  ;;  %v148_v37 = vsel %vm147_vm0, %v145_v29, %v146_v31  ;;  %v1255_v39 = vpack.c.bf16 %v177_v36, %v176_v35  ;;  %v161_v41 = vld [vmem:[#allocation8 + $0x58] sm:$0xff]  ;;  %v179_v43 = vld [vmem:[#allocation8 + $0xe8] sm:$0xff]  ;;  %v162_v46 = vld [vmem:[#allocation8 + $0x60] sm:$0xff]  ;;  %v149_v55 = vsel %vm147_vm0, %v146_v31, %v145_v29 }
  0x86   :  { %253 = vmatprep.mubr.f32.mxu0 %v148_v37  ;;  %v1257_v44 = vpack.c.bf16 %v161_v41, %v160_v40  ;;  %v1259_v45 = vpack.c.bf16 %v179_v43, %v178_v42  ;;  %v163_v47 = vld [vmem:[#allocation8 + $0x68] sm:$0xff]  ;;  %v180_v48 = vld [vmem:[#allocation8 + $0xf0] sm:$0xff]  ;;  %v181_v49 = vld [vmem:[#allocation8 + $0xf8] sm:$0xff] }
  0x87   :  { %v1261_v50 = vpack.c.bf16 %v163_v47, %v162_v46  ;;  %v1263_v51 = vpack.c.bf16 %v181_v49, %v180_v48  ;;  %v164_v52 = vld [vmem:[#allocation8 + $0x70] sm:$0xff]  ;;  %v165_v53 = vld [vmem:[#allocation8 + $0x78] sm:$0xff]  ;;  %v306_v56 = vld [vmem:[#allocation10 + $0x80] sm:$0xff] }
  0x88   :  { %1246 = vmatpush3.bf16.msra.mxu0 %v1245_v21  ;;  %v1265_v54 = vpack.c.bf16 %v165_v53, %v164_v52  ;;  %v307_v57 = vld [vmem:[#allocation10 + $0x88] sm:$0xff]  ;;  %v290_v59 = vld [vmem:[#allocation10] sm:$0xff]  ;;  %v308_v62 = vld [vmem:[#allocation10 + $0x90] sm:$0xff] }
  0x89   :  { %1248 = vmatprep.subr.bf16.mxu0 %v1247_v22  ;;  %v1267_v58 = vpack.c.bf16 %v307_v57, %v306_v56  ;;  %v291_v60 = vld [vmem:[#allocation10 + $0x8] sm:$0xff]  ;;  %v309_v63 = vld [vmem:[#allocation10 + $0x98] sm:$0xff]  ;;  %v292_v1 = vld [vmem:[#allocation10 + $0x10] sm:$0xff]  ;;  %v1866_v56 = vadd.s32 8, %v1855_v20 }
  0x8a   :  { %v1269_v61 = vpack.c.bf16 %v291_v60, %v290_v59  ;;  %v1271_v0 = vpack.c.bf16 %v309_v63, %v308_v62  ;;  %v293_v2 = vld [vmem:[#allocation10 + $0x18] sm:$0xff]  ;;  %v310_v4 = vld [vmem:[#allocation10 + $0xa0] sm:$0xff]  ;;  %v311_v5 = vld [vmem:[#allocation10 + $0xa8] sm:$0xff] }
  0x8b   :  { %1268 = vmatprep.subr.bf16.mxu1 %v1267_v58  ;;  %v1273_v3 = vpack.c.bf16 %v293_v2, %v292_v1  ;;  %v1275_v6 = vpack.c.bf16 %v311_v5, %v310_v4  ;;  %v294_v7 = vld [vmem:[#allocation10 + $0x20] sm:$0xff]  ;;  %v295_v8 = vld [vmem:[#allocation10 + $0x28] sm:$0xff]  ;;  %v312_v10 = vld [vmem:[#allocation10 + $0xb0] sm:$0xff]  ;;  %vm275_vm1 = vcmp.lt.s32.totalorder %v1866_v56, 15  ;;  %vm415_vm2 = vcmp.lt.s32.totalorder %v1866_v56, 14 }
  0x8c   :  { %1250 = vmatpush3.bf16.msra.mxu0 %v1249_v30  ;;  %1270 = vmatpush3.bf16.msra.mxu1 %v1269_v61  ;;  %v1277_v9 = vpack.c.bf16 %v295_v8, %v294_v7  ;;  %v313_v11 = vld [vmem:[#allocation10 + $0xb8] sm:$0xff]  ;;  %v296_v13 = vld [vmem:[#allocation10 + $0x30] sm:$0xff]  ;;  %v314_v16 = vld [vmem:[#allocation10 + $0xc0] sm:$0xff]  ;;  %vm555_vm3 = vcmp.lt.s32.totalorder %v1866_v56, 13 }
  0x8d   :  { %1252 = vmatprep.subr.bf16.mxu0 %v1251_v32  ;;  %1272 = vmatprep.subr.bf16.mxu1 %v1271_v0  ;;  %v1279_v12 = vpack.c.bf16 %v313_v11, %v312_v10  ;;  %v297_v14 = vld [vmem:[#allocation10 + $0x38] sm:$0xff]  ;;  %v315_v17 = vld [vmem:[#allocation10 + $0xc8] sm:$0xff]  ;;  %v298_v19 = vld [vmem:[#allocation10 + $0x40] sm:$0xff] }
  0x8e   :  { %v1281_v15 = vpack.c.bf16 %v297_v14, %v296_v13  ;;  %v1283_v18 = vpack.c.bf16 %v315_v17, %v314_v16  ;;  %v299_v21 = vld [vmem:[#allocation10 + $0x48] sm:$0xff]  ;;  %v316_v23 = vld [vmem:[#allocation10 + $0xd0] sm:$0xff]  ;;  %v317_v24 = vld [vmem:[#allocation10 + $0xd8] sm:$0xff] }
  0x8f   :  { %v1285_v22 = vpack.c.bf16 %v299_v21, %v298_v19  ;;  %v1287_v25 = vpack.c.bf16 %v317_v24, %v316_v23  ;;  %v300_v26 = vld [vmem:[#allocation10 + $0x50] sm:$0xff]  ;;  %v318_v29 = vld [vmem:[#allocation10 + $0xe0] sm:$0xff]  ;;  %v319_v30 = vld [vmem:[#allocation10 + $0xe8] sm:$0xff] }
  0x90   :  { %1254 = vmatpush3.bf16.msra.mxu0 %v1253_v38  ;;  %1274 = vmatpush3.bf16.msra.mxu1 %v1273_v3  ;;  %v1291_v31 = vpack.c.bf16 %v319_v30, %v318_v29  ;;  %v302_v32 = vld [vmem:[#allocation10 + $0x60] sm:$0xff]  ;;  %v303_v33 = vld [vmem:[#allocation10 + $0x68] sm:$0xff]  ;;  %v320_v35 = vld [vmem:[#allocation10 + $0xf0] sm:$0xff] }
  0x91   :  { %1256 = vmatprep.subr.bf16.mxu0 %v1255_v39  ;;  %1276 = vmatprep.subr.bf16.mxu1 %v1275_v6  ;;  %v1293_v34 = vpack.c.bf16 %v303_v33, %v302_v32  ;;  %v321_v36 = vld [vmem:[#allocation10 + $0xf8] sm:$0xff]  ;;  %v304_v37 = vld [vmem:[#allocation10 + $0x70] sm:$0xff]  ;;  %v446_v2 = vld [vmem:[#allocation11 + $0x80] sm:$0xff] }
  0x92   :  { %v1295_v38 = vpack.c.bf16 %v321_v36, %v320_v35  ;;  %v305_v39 = vld [vmem:[#allocation10 + $0x78] sm:$0xff]  ;;  %v997_v42 = vld [vmem:[%s1960_s2] ss:$0 sm:$0xff]  ;;  %v447_v3 = vld [vmem:[#allocation11 + $0x88] sm:$0xff] }
  0x93   :  { %v1297_v40 = vpack.c.bf16 %v305_v39, %v304_v37  ;;  %v1299_v4 = vpack.c.bf16 %v447_v3, %v446_v2  ;;  %v430_v5 = vld [vmem:[#allocation11] sm:$0xff]  ;;  %v431_v6 = vld [vmem:[#allocation11 + $0x8] sm:$0xff]  ;;  %v448_v8 = vld [vmem:[#allocation11 + $0x90] sm:$0xff] }
  0x94   :  { %1258 = vmatpush3.bf16.msra.mxu0 %v1257_v44  ;;  %1278 = vmatpush3.bf16.msra.mxu1 %v1277_v9  ;;  %v1301_v7 = vpack.c.bf16 %v431_v6, %v430_v5  ;;  %v449_v9 = vld [vmem:[#allocation11 + $0x98] sm:$0xff]  ;;  %v432_v11 = vld [vmem:[#allocation11 + $0x10] sm:$0xff]  ;;  %v450_v14 = vld [vmem:[#allocation11 + $0xa0] sm:$0xff] }
  0x95   :  { %1260 = vmatprep.subr.bf16.mxu0 %v1259_v45  ;;  %1280 = vmatprep.subr.bf16.mxu1 %v1279_v12  ;;  %v1303_v10 = vpack.c.bf16 %v449_v9, %v448_v8  ;;  %v433_v12 = vld [vmem:[#allocation11 + $0x18] sm:$0xff]  ;;  %v434_v17 = vld [vmem:[#allocation11 + $0x20] sm:$0xff]  ;;  %v452_v21 = vld [vmem:[#allocation11 + $0xb0] sm:$0xff] }
  0x96   :  { %v1305_v13 = vpack.c.bf16 %v433_v12, %v432_v11  ;;  %v436_v24 = vld [vmem:[#allocation11 + $0x30] sm:$0xff]  ;;  %v438_v30 = vld [vmem:[#allocation11 + $0x40] sm:$0xff]  ;;  %v441_v37 = vld [vmem:[#allocation11 + $0x58] sm:$0xff] }
  0x97   :  { %v456_v33 = vld [vmem:[#allocation11 + $0xd0] sm:$0xff]  ;;  %v458_v39 = vld [vmem:[#allocation11 + $0xe0] sm:$0xff] }
  0x98   :  { %1262 = vmatpush3.bf16.msra.mxu0 %v1261_v50  ;;  %1282 = vmatpush3.bf16.msra.mxu1 %v1281_v15  ;;  %v451_v15 = vld [vmem:[#allocation11 + $0xa8] sm:$0xff]  ;;  %v440_v36 = vld [vmem:[#allocation11 + $0x50] sm:$0xff] }
  0x99   :  { %1264 = vmatprep.subr.bf16.mxu0 %v1263_v51  ;;  %1284 = vmatprep.subr.bf16.mxu1 %v1283_v18  ;;  %v1307_v16 = vpack.c.bf16 %v451_v15, %v450_v14  ;;  %v435_v18 = vld [vmem:[#allocation11 + $0x28] sm:$0xff]  ;;  %v591_v14 = vld [vmem:[#allocation16 + $0x80] sm:$0xff]  ;;  %v1002_v56 = vld [vmem:[%s1966_s8] ss:$0 sm:$0xff]  ;;  %s1617_s8 = scalar_lea.vmem %s983_s3, 256 }
  0x9a   :  { %v1309_v19 = vpack.c.bf16 %v435_v18, %v434_v17  ;;  %v592_v15 = vld [vmem:[#allocation16 + $0x88] sm:$0xff]  ;;  %v575_v17 = vld [vmem:[#allocation16] sm:$0xff]  ;;  %p1618_p0 = scmp.ne.s32.totalorder %s983_s3, %s1617_s8  ;;  %p1623_p2 = scmp.lt.s32.totalorder %s1617_s8, %s1617_s8 }
  0x9b   :  { %v576_v18 = vld [vmem:[#allocation16 + $0x8] sm:$0xff] }
  0x9c   :  { %1266 = vmatpush3.bf16.msra.mxu0 %v1265_v54  ;;  %1286 = vmatpush3.bf16.msra.mxu1 %v1285_v22  ;;  %v453_v22 = vld [vmem:[#allocation11 + $0xb8] sm:$0xff]  ;;  %p1624_p3 = por %p1623_p2, %p1622_p1 }
  0x9d   :  { %1288 = vmatprep.subr.bf16.mxu1 %v1287_v25  ;;  %1300 = vmatprep.subr.bf16.mxu0 %v1299_v4  ;;  %v1311_v23 = vpack.c.bf16 %v453_v22, %v452_v21  ;;  %v437_v25 = vld [vmem:[#allocation11 + $0x38] sm:$0xff]  ;;  %v593_v21 = vld [vmem:[#allocation16 + $0x90] sm:$0xff] }
  0x9e   :  { %v594_v22 = vld [vmem:[#allocation16 + $0x98] sm:$0xff]  ;;  %p1625_p4 = pnand %p1624_p3, %p1618_p0 }
  0x9f   :  { %254 = vmatmul.mubr.f32.vlgmr.msra.gmra.mrb[0].mxu0 %v143_v27  ;;  %v301_v27 = vld [vmem:[#allocation10 + $0x58] sm:$0xff] }
  0xa0   :  { %258 = vmatprep.mubr.f32.mxu0 %v149_v55  ;;  %1302 = vmatpush3.bf16.msra.mxu0 %v1301_v7 }
  0xa1   :  { %1304 = vmatprep.subr.bf16.mxu0 %v1303_v10 }
  0xa3   :  { %259 = vmatmul.mubr.f32.gmra.mrb[2].mxu0 %v144_v28  ;;  %v1289_v28 = vpack.c.bf16 %v301_v27, %v300_v26  ;;  %v1313_v26 = vpack.c.bf16 %v437_v25, %v436_v24  ;;  %v454_v27 = vld [vmem:[#allocation11 + $0xc0] sm:$0xff]  ;;  %v577_v24 = vld [vmem:[#allocation16 + $0x10] sm:$0xff]  ;;  %v578_v25 = vld [vmem:[#allocation16 + $0x18] sm:$0xff] }
  0xa4   :  { %1306 = vmatpush3.bf16.msra.mxu0 %v1305_v13 }
  0xa5   :  { %1290 = vmatpush3.bf16.msra.mxu1 %v1289_v28  ;;  %1308 = vmatprep.subr.bf16.mxu0 %v1307_v16  ;;  %v455_v28 = vld [vmem:[#allocation11 + $0xc8] sm:$0xff]  ;;  %v1331_v16 = vpack.c.bf16 %v592_v15, %v591_v14 }
  0xa6   :  { %1292 = vmatprep.subr.bf16.mxu1 %v1291_v31  ;;  %v1315_v29 = vpack.c.bf16 %v455_v28, %v454_v27  ;;  %v439_v31 = vld [vmem:[#allocation11 + $0x48] sm:$0xff]  ;;  %v595_v27 = vld [vmem:[#allocation16 + $0xa0] sm:$0xff] }
  0xa7   :  { %v1317_v32 = vpack.c.bf16 %v439_v31, %v438_v30  ;;  %v596_v28 = vld [vmem:[#allocation16 + $0xa8] sm:$0xff]  ;;  %v579_v30 = vld [vmem:[#allocation16 + $0x20] sm:$0xff] }
  0xa8   :  { %1310 = vmatpush3.bf16.msra.mxu0 %v1309_v19  ;;  %v1333_v19 = vpack.c.bf16 %v576_v18, %v575_v17  ;;  %v580_v31 = vld [vmem:[#allocation16 + $0x28] sm:$0xff] }
  0xa9   :  { %1294 = vmatpush3.bf16.msra.mxu1 %v1293_v34  ;;  %1312 = vmatprep.subr.bf16.mxu0 %v1311_v23  ;;  %v457_v34 = vld [vmem:[#allocation11 + $0xd8] sm:$0xff]  ;;  %v1335_v23 = vpack.c.bf16 %v594_v22, %v593_v21 }
  0xaa   :  { %1296 = vmatprep.subr.bf16.mxu1 %v1295_v38  ;;  %v1319_v35 = vpack.c.bf16 %v457_v34, %v456_v33  ;;  %v1321_v38 = vpack.c.bf16 %v441_v37, %v440_v36  ;;  %v597_v33 = vld [vmem:[#allocation16 + $0xb0] sm:$0xff]  ;;  %v598_v34 = vld [vmem:[#allocation16 + $0xb8] sm:$0xff] }
  0xab   :  { %v581_v36 = vld [vmem:[#allocation16 + $0x30] sm:$0xff]  ;;  %v582_v37 = vld [vmem:[#allocation16 + $0x38] sm:$0xff] }
  0xac   :  { %1314 = vmatpush3.bf16.msra.mxu0 %v1313_v26  ;;  %v1337_v26 = vpack.c.bf16 %v578_v25, %v577_v24 }
  0xad   :  { %1298 = vmatpush3.bf16.msra.mxu1 %v1297_v40  ;;  %1316 = vmatprep.subr.bf16.mxu0 %v1315_v29  ;;  %v459_v40 = vld [vmem:[#allocation11 + $0xe8] sm:$0xff]  ;;  %v1339_v29 = vpack.c.bf16 %v596_v28, %v595_v27 }
  0xae   :  { %1332 = vmatprep.subr.bf16.mxu1 %v1331_v16 }
  0xb0   :  { %1318 = vmatpush3.bf16.msra.mxu0 %v1317_v32  ;;  %v1341_v32 = vpack.c.bf16 %v580_v31, %v579_v30  ;;  %v729_v31 = vld [vmem:[#allocation14 + $0x80] sm:$0xff] }
  0xb1   :  { %1320 = vmatprep.subr.bf16.mxu0 %v1319_v35  ;;  %v1343_v35 = vpack.c.bf16 %v598_v34, %v597_v33  ;;  %v713_v34 = vld [vmem:[#allocation14] sm:$0xff] }
  0xb4   :  { %1322 = vmatpush3.bf16.msra.mxu0 %v1321_v38  ;;  %v1345_v38 = vpack.c.bf16 %v582_v37, %v581_v36  ;;  %v731_v37 = vld [vmem:[#allocation14 + $0x90] sm:$0xff] }
 0x172   :  { %v1039_v41 = vpop.f32.mrb[0].mxu0 }
 0x173   :  { %v1040_v43 = vpop.f32.mrb[1].mxu0 }
 0x174   :  { %v1041_v44 = vadd.f32 %v1040_v43, %v1039_v41  ;;  %v1323_v41 = vpack.c.bf16 %v459_v40, %v458_v39  ;;  %v443_v43 = vld [vmem:[#allocation11 + $0x68] sm:$0xff]  ;;  %v599_v39 = vld [vmem:[#allocation16 + $0xc0] sm:$0xff] }
 0x175   :  { %v600_v40 = vld [vmem:[#allocation16 + $0xc8] sm:$0xff] }
 0x176   :  { %v256_v45 = vadd.f32 %v1041_v44, %v997_v42  ;;  %v1042_v46 = vpop.f32.mrb[2].mxu0  ;;  %1324 = vmatprep.subr.bf16.mxu0 %v1323_v41  ;;  %v1347_v41 = vpack.c.bf16 %v600_v40, %v599_v39  ;;  %v715_v40 = vld [vmem:[#allocation14 + $0x10] sm:$0xff] }
 0x177   :  { %v1043_v47 = vpop.f32.mrb[3].mxu0 }
 0x178   :  { %v264_v48 = vmul.f32 0.5, %v256_v45  ;;  %v1044_v49 = vadd.f32 %v1043_v47, %v1042_v46  ;;  %v461_v46 = vld [vmem:[#allocation11 + $0xf8] sm:$0xff]  ;;  %v444_v47 = vld [vmem:[#allocation11 + $0x70] sm:$0xff] }
 0x17a   :  { %1437 = vtanh.f32 %v264_v48  ;;  %v261_v50 = vadd.f32 %v1044_v49, %v997_v42  ;;  %v442_v42 = vld [vmem:[#allocation11 + $0x60] sm:$0xff]  ;;  %v445_v49 = vld [vmem:[#allocation11 + $0x78] sm:$0xff] }
 0x17b   :  { %v1325_v44 = vpack.c.bf16 %v443_v43, %v442_v42  ;;  %v583_v42 = vld [vmem:[#allocation16 + $0x40] sm:$0xff]  ;;  %v584_v43 = vld [vmem:[#allocation16 + $0x48] sm:$0xff] }
 0x17c   :  { %v265_v51 = vmul.f32 0.5, %v261_v50 }
 0x17d   :  { %1326 = vmatpush3.bf16.msra.mxu0 %v1325_v44  ;;  %v1349_v44 = vpack.c.bf16 %v584_v43, %v583_v42  ;;  %v734_v43 = vld [vmem:[#allocation14 + $0xa8] sm:$0xff] }
 0x17e   :  { %1439 = vtanh.f32 %v265_v51 }
 0x184   :  { %v1438_v52 = vpop.eup %1437 }
 0x185   :  { %v268_v53 = vmul.f32 0.5, %v1438_v52  ;;  %v998_v52 = vld [vmem:[%s1962_s4] ss:$0 sm:$0xff] }
 0x187   :  { %v270_v55 = vadd.f32 0.5, %v268_v53 }
 0x188   :  { %v1440_v54 = vpop.eup %1439 }
 0x189   :  { %v269_v57 = vmul.f32 0.5, %v1440_v54  ;;  %v1868_v59 = vmul.f32 %v270_v55, %v256_v45  ;;  %v460_v45 = vld [vmem:[#allocation11 + $0xf0] sm:$0xff] }
 0x18a   :  { %v1327_v48 = vpack.c.bf16 %v461_v46, %v460_v45  ;;  %v601_v45 = vld [vmem:[#allocation16 + $0xd0] sm:$0xff]  ;;  %v602_v46 = vld [vmem:[#allocation16 + $0xd8] sm:$0xff] }
 0x18b   :  { %v271_v58 = vadd.f32 0.5, %v269_v57  ;;  %v286_v62 = vrot.slane %v1868_v59, 1 }
 0x18c   :  { %1328 = vmatprep.subr.bf16.mxu0 %v1327_v48  ;;  %v585_v48 = vld [vmem:[#allocation16 + $0x50] sm:$0xff] }
 0x18d   :  { %v1871_v60 = vmul.f32 %v271_v58, %v261_v50  ;;  %v1329_v50 = vpack.c.bf16 %v445_v49, %v444_v47  ;;  %v1351_v47 = vpack.c.bf16 %v602_v46, %v601_v45  ;;  %v586_v49 = vld [vmem:[#allocation16 + $0x58] sm:$0xff]  ;;  %v718_v45 = vld [vmem:[#allocation14 + $0x28] sm:$0xff] }
 0x18f   :  { %v281_v61 = vsel %vm275_vm1, %v1871_v60, 0.0  ;;  %1330 = vmatpush3.bf16.msra.mxu0 %v1329_v50  ;;  %v1353_v50 = vpack.c.bf16 %v586_v49, %v585_v48  ;;  %v736_v48 = vld [vmem:[#allocation14 + $0xb8] sm:$0xff] }
 0x190   :  { %v287_v63 = vrot.slane %v281_v61, 1 }
 0x192   :  { %v288_v0 = vsel %vm147_vm0, %v286_v62, %v287_v63  ;;  %v289_v1 = vsel %vm147_vm0, %v287_v63, %v286_v62 }
 0x193   :  { %393 = vmatprep.mubr.f32.mxu1 %v288_v0 }
 0x194   :  { %394 = vmatmul.mubr.f32.vlgmr.msra.gmra.mrb[0].mxu1 %v1868_v59 }
 0x195   :  { %398 = vmatprep.mubr.f32.mxu1 %v289_v1  ;;  %1334 = vmatpush3.bf16.msra.mxu1 %v1333_v19 }
 0x196   :  { %1336 = vmatprep.subr.bf16.mxu1 %v1335_v23 }
 0x198   :  { %1003 = vmatmul.mubr.msk.f32.gmra.mrb[2].mxu1 %vm275_vm1, %v1871_v60 }
 0x199   :  { %1338 = vmatpush3.bf16.msra.mxu1 %v1337_v26 }
 0x19a   :  { %1340 = vmatprep.subr.bf16.mxu1 %v1339_v29 }
 0x19d   :  { %1342 = vmatpush3.bf16.msra.mxu1 %v1341_v32  ;;  %v730_v32 = vld [vmem:[#allocation14 + $0x88] sm:$0xff] }
 0x19e   :  { %1344 = vmatprep.subr.bf16.mxu1 %v1343_v35  ;;  %v1363_v33 = vpack.c.bf16 %v730_v32, %v729_v31  ;;  %v714_v35 = vld [vmem:[#allocation14 + $0x8] sm:$0xff] }
 0x19f   :  { %v1365_v36 = vpack.c.bf16 %v714_v35, %v713_v34 }
 0x1a0   :  { %1364 = vmatprep.subr.bf16.mxu0 %v1363_v33 }
 0x1a1   :  { %1346 = vmatpush3.bf16.msra.mxu1 %v1345_v38  ;;  %v732_v38 = vld [vmem:[#allocation14 + $0x98] sm:$0xff] }
 0x1a2   :  { %1348 = vmatprep.subr.bf16.mxu1 %v1347_v41  ;;  %v1367_v39 = vpack.c.bf16 %v732_v38, %v731_v37  ;;  %v716_v41 = vld [vmem:[#allocation14 + $0x18] sm:$0xff] }
 0x1a3   :  { %v1369_v42 = vpack.c.bf16 %v716_v41, %v715_v40 }
 0x1a5   :  { %1350 = vmatpush3.bf16.msra.mxu1 %v1349_v44 }
 0x1a6   :  { %1352 = vmatprep.subr.bf16.mxu1 %v1351_v47  ;;  %v735_v47 = vld [vmem:[#allocation14 + $0xb0] sm:$0xff] }
 0x1a7   :  { %v1375_v49 = vpack.c.bf16 %v736_v48, %v735_v47  ;;  %v852_v47 = vld [vmem:[#allocation13 + $0x8] sm:$0xff] }
 0x1a9   :  { %1354 = vmatpush3.bf16.msra.mxu1 %v1353_v50  ;;  %v719_v50 = vld [vmem:[#allocation14 + $0x30] sm:$0xff] }
 0x267   :  { %v1077_v51 = vpop.f32.mrb[0].mxu1 }
 0x268   :  { %v1078_v53 = vpop.f32.mrb[1].mxu1 }
 0x269   :  { %v1079_v54 = vadd.f32 %v1078_v53, %v1077_v51  ;;  %v603_v51 = vld [vmem:[#allocation16 + $0xe0] sm:$0xff] }
 0x26b   :  { %v396_v55 = vadd.f32 %v1079_v54, %v998_v52  ;;  %v1080_v57 = vpop.f32.mrb[2].mxu1  ;;  %v587_v54 = vld [vmem:[#allocation16 + $0x60] sm:$0xff] }
 0x26c   :  { %v1081_v58 = vpop.f32.mrb[3].mxu1 }
 0x26d   :  { %v404_v61 = vmul.f32 0.5, %v396_v55  ;;  %v1082_v62 = vadd.f32 %v1081_v58, %v1080_v57  ;;  %v605_v58 = vld [vmem:[#allocation16 + $0xf0] sm:$0xff] }
 0x26f   :  { %1441 = vtanh.f32 %v404_v61  ;;  %v401_v63 = vadd.f32 %v1082_v62, %v998_v52  ;;  %v604_v52 = vld [vmem:[#allocation16 + $0xe8] sm:$0xff]  ;;  %v606_v61 = vld [vmem:[#allocation16 + $0xf8] sm:$0xff] }
 0x270   :  { %v1355_v53 = vpack.c.bf16 %v604_v52, %v603_v51  ;;  %v1359_v62 = vpack.c.bf16 %v606_v61, %v605_v58  ;;  %v720_v51 = vld [vmem:[#allocation14 + $0x38] sm:$0xff]  ;;  %v722_v58 = vld [vmem:[#allocation14 + $0x48] sm:$0xff] }
 0x271   :  { %v405_v0 = vmul.f32 0.5, %v401_v63  ;;  %v1377_v52 = vpack.c.bf16 %v720_v51, %v719_v50  ;;  %v870_v50 = vld [vmem:[#allocation13 + $0x98] sm:$0xff] }
 0x272   :  { %1356 = vmatprep.subr.bf16.mxu1 %v1355_v53  ;;  %v737_v53 = vld [vmem:[#allocation14 + $0xc0] sm:$0xff] }
 0x273   :  { %1443 = vtanh.f32 %v405_v0  ;;  %v590_v0 = vld [vmem:[#allocation16 + $0x78] sm:$0xff] }
 0x279   :  { %v1442_v1 = vpop.eup %1441 }
 0x27a   :  { %v408_v2 = vmul.f32 0.5, %v1442_v1 }
 0x27c   :  { %v410_v4 = vadd.f32 0.5, %v408_v2 }
 0x27d   :  { %v1444_v3 = vpop.eup %1443 }
 0x27e   :  { %v409_v5 = vmul.f32 0.5, %v1444_v3  ;;  %v1888_v7 = vmul.f32 %v410_v4, %v396_v55  ;;  %v588_v55 = vld [vmem:[#allocation16 + $0x68] sm:$0xff]  ;;  %v999_v3 = vld [vmem:[%s1964_s6] ss:$0 sm:$0xff] }
 0x27f   :  { %v1357_v57 = vpack.c.bf16 %v588_v55, %v587_v54  ;;  %v738_v54 = vld [vmem:[#allocation14 + $0xc8] sm:$0xff] }
 0x280   :  { %v411_v6 = vadd.f32 0.5, %v409_v5  ;;  %v426_v10 = vrot.slane %v1888_v7, 1  ;;  %v1379_v55 = vpack.c.bf16 %v738_v54, %v737_v53  ;;  %v854_v53 = vld [vmem:[#allocation13 + $0x18] sm:$0xff] }
 0x281   :  { %1358 = vmatpush3.bf16.msra.mxu1 %v1357_v57  ;;  %v721_v57 = vld [vmem:[#allocation14 + $0x40] sm:$0xff] }
 0x282   :  { %v1891_v8 = vmul.f32 %v411_v6, %v401_v63  ;;  %v589_v63 = vld [vmem:[#allocation16 + $0x70] sm:$0xff]  ;;  %1360 = vmatprep.subr.bf16.mxu1 %v1359_v62  ;;  %v1381_v61 = vpack.c.bf16 %v722_v58, %v721_v57  ;;  %v856_v58 = vld [vmem:[#allocation13 + $0x28] sm:$0xff] }
 0x283   :  { %v1361_v1 = vpack.c.bf16 %v590_v0, %v589_v63  ;;  %v739_v62 = vld [vmem:[#allocation14 + $0xd0] sm:$0xff]  ;;  %v740_v63 = vld [vmem:[#allocation14 + $0xd8] sm:$0xff] }
 0x284   :  { %v421_v9 = vsel %vm415_vm2, %v1891_v8, 0.0  ;;  %v1383_v0 = vpack.c.bf16 %v740_v63, %v739_v62  ;;  %v873_v62 = vld [vmem:[#allocation13 + $0xb0] sm:$0xff]  ;;  %v874_v63 = vld [vmem:[#allocation13 + $0xb8] sm:$0xff] }
 0x285   :  { %v427_v11 = vrot.slane %v421_v9, 1  ;;  %1362 = vmatpush3.bf16.msra.mxu1 %v1361_v1  ;;  %v723_v1 = vld [vmem:[#allocation14 + $0x50] sm:$0xff] }
 0x287   :  { %v428_v12 = vsel %vm147_vm0, %v426_v10, %v427_v11  ;;  %v429_v13 = vsel %vm147_vm0, %v427_v11, %v426_v10 }
 0x288   :  { %533 = vmatprep.mubr.f32.mxu0 %v428_v12 }
 0x289   :  { %534 = vmatmul.mubr.f32.vlgmr.msra.gmra.mrb[4].mxu0 %v1888_v7 }
 0x28a   :  { %538 = vmatprep.mubr.f32.mxu0 %v429_v13  ;;  %1366 = vmatpush3.bf16.msra.mxu0 %v1365_v36 }
 0x28b   :  { %1368 = vmatprep.subr.bf16.mxu0 %v1367_v39 }
 0x28d   :  { %1004 = vmatmul.mubr.msk.f32.gmra.mrb[6].mxu0 %vm415_vm2, %v1891_v8 }
 0x28e   :  { %1370 = vmatpush3.bf16.msra.mxu0 %v1369_v42 }
 0x35c   :  { %v1115_v2 = vpop.f32.mrb[4].mxu0 }
 0x35d   :  { %v1116_v4 = vpop.f32.mrb[5].mxu0 }
 0x35e   :  { %v1117_v5 = vadd.f32 %v1116_v4, %v1115_v2  ;;  %v724_v2 = vld [vmem:[#allocation14 + $0x58] sm:$0xff]  ;;  %v741_v4 = vld [vmem:[#allocation14 + $0xe0] sm:$0xff] }
 0x360   :  { %v536_v6 = vadd.f32 %v1117_v5, %v999_v3  ;;  %v1118_v9 = vpop.f32.mrb[6].mxu0  ;;  %v742_v5 = vld [vmem:[#allocation14 + $0xe8] sm:$0xff] }
 0x361   :  { %v1119_v10 = vpop.f32.mrb[7].mxu0 }
 0x362   :  { %v544_v11 = vmul.f32 0.5, %v536_v6  ;;  %v1120_v12 = vadd.f32 %v1119_v10, %v1118_v9  ;;  %v725_v9 = vld [vmem:[#allocation14 + $0x60] sm:$0xff]  ;;  %v726_v10 = vld [vmem:[#allocation14 + $0x68] sm:$0xff] }
 0x364   :  { %1445 = vtanh.f32 %v544_v11  ;;  %v541_v13 = vadd.f32 %v1120_v12, %v999_v3  ;;  %v1385_v3 = vpack.c.bf16 %v724_v2, %v723_v1  ;;  %v1389_v11 = vpack.c.bf16 %v726_v10, %v725_v9  ;;  %v743_v12 = vld [vmem:[#allocation14 + $0xf0] sm:$0xff]  ;;  %v858_v2 = vld [vmem:[#allocation13 + $0x38] sm:$0xff]  ;;  %v859_v9 = vld [vmem:[#allocation13 + $0x40] sm:$0xff] }
 0x365   :  { %v857_v1 = vld [vmem:[#allocation13 + $0x30] sm:$0xff]  ;;  %v860_v10 = vld [vmem:[#allocation13 + $0x48] sm:$0xff] }
 0x366   :  { %v545_v14 = vmul.f32 0.5, %v541_v13 }
 0x368   :  { %1447 = vtanh.f32 %v545_v14 }
 0x36e   :  { %v1446_v15 = vpop.eup %1445 }
 0x36f   :  { %v548_v16 = vmul.f32 0.5, %v1446_v15  ;;  %v727_v15 = vld [vmem:[#allocation14 + $0x70] sm:$0xff] }
 0x371   :  { %v550_v18 = vadd.f32 0.5, %v548_v16  ;;  %v728_v16 = vld [vmem:[#allocation14 + $0x78] sm:$0xff] }
 0x372   :  { %v1448_v17 = vpop.eup %1447 }
 0x373   :  { %v549_v19 = vmul.f32 0.5, %v1448_v17  ;;  %v552_v22 = vmul.f32 %v550_v18, %v536_v6  ;;  %v1387_v6 = vpack.c.bf16 %v742_v5, %v741_v4  ;;  %v1393_v17 = vpack.c.bf16 %v728_v16, %v727_v15  ;;  %v875_v4 = vld [vmem:[#allocation13 + $0xc0] sm:$0xff]  ;;  %v876_v5 = vld [vmem:[#allocation13 + $0xc8] sm:$0xff]  ;;  %v861_v15 = vld [vmem:[#allocation13 + $0x50] sm:$0xff] }
 0x374   :  { %v862_v16 = vld [vmem:[#allocation13 + $0x58] sm:$0xff] }
 0x375   :  { %v551_v21 = vadd.f32 0.5, %v549_v19  ;;  %v566_v25 = vrot.slane %v552_v22, 7  ;;  %v1000_v19 = vld [vmem:[%s1970_s12] ss:$0 sm:$0xff] }
 0x377   :  { %v553_v23 = vmul.f32 %v551_v21, %v541_v13  ;;  %v744_v13 = vld [vmem:[#allocation14 + $0xf8] sm:$0xff] }
 0x378   :  { %v1391_v14 = vpack.c.bf16 %v744_v13, %v743_v12  ;;  %v877_v12 = vld [vmem:[#allocation13 + $0xd0] sm:$0xff]  ;;  %v878_v13 = vld [vmem:[#allocation13 + $0xd8] sm:$0xff] }
 0x379   :  { %v561_v24 = vsel %vm555_vm3, %v553_v23, 0.0 }
 0x37a   :  { %v567_v26 = vrot.slane %v561_v24, 7 }
 0x37c   :  { %v570_v27 = vsel %vm568_vm4, %v567_v26, %v566_v25  ;;  %v569_v28 = vsel %vm568_vm4, %v566_v25, %v567_v26 }
 0x37d   :  { %v571_v29 = vadd.f32 %v570_v27, %v552_v22  ;;  %v572_v30 = vadd.f32 %v569_v28, %v561_v24 }
 0x37f   :  { %678 = vmatprep.mubr.f32.mxu1 %v571_v29 }
 0x380   :  { %679 = vmatmul.mubr.f32.vlgmr.msra.gmra.mrb[4].mxu1 %v1888_v7  ;;  %v733_v7 = vld [vmem:[#allocation14 + $0xa0] sm:$0xff] }
 0x381   :  { %683 = vmatprep.mubr.f32.mxu1 %v572_v30  ;;  %v1371_v44 = vpack.c.bf16 %v734_v43, %v733_v7 }
 0x383   :  { %1372 = vmatprep.subr.bf16.mxu0 %v1371_v44  ;;  %v867_v44 = vld [vmem:[#allocation13 + $0x80] sm:$0xff] }
 0x384   :  { %1005 = vmatmul.mubr.msk.f32.gmra.mrb[6].mxu1 %vm415_vm2, %v1891_v8  ;;  %v717_v8 = vld [vmem:[#allocation14 + $0x20] sm:$0xff] }
 0x385   :  { %v1373_v46 = vpack.c.bf16 %v718_v45, %v717_v8  ;;  %v868_v8 = vld [vmem:[#allocation13 + $0x88] sm:$0xff] }
 0x386   :  { %v1395_v45 = vpack.c.bf16 %v868_v8, %v867_v44 }
 0x387   :  { %1374 = vmatpush3.bf16.msra.mxu0 %v1373_v46  ;;  %v851_v46 = vld [vmem:[#allocation13] sm:$0xff] }
 0x388   :  { %1376 = vmatprep.subr.bf16.mxu0 %v1375_v49  ;;  %v1397_v48 = vpack.c.bf16 %v852_v47, %v851_v46  ;;  %1396 = vmatprep.subr.bf16.mxu1 %v1395_v45  ;;  %v869_v49 = vld [vmem:[#allocation13 + $0x90] sm:$0xff] }
 0x389   :  { %v1399_v51 = vpack.c.bf16 %v870_v50, %v869_v49 }
 0x38a   :  { %1398 = vmatpush3.bf16.msra.mxu1 %v1397_v48 }
 0x38b   :  { %1378 = vmatpush3.bf16.msra.mxu0 %v1377_v52  ;;  %v853_v52 = vld [vmem:[#allocation13 + $0x10] sm:$0xff]  ;;  %1400 = vmatprep.subr.bf16.mxu1 %v1399_v51 }
 0x38c   :  { %1380 = vmatprep.subr.bf16.mxu0 %v1379_v55  ;;  %v1401_v54 = vpack.c.bf16 %v854_v53, %v853_v52  ;;  %v872_v55 = vld [vmem:[#allocation13 + $0xa8] sm:$0xff] }
 0x38e   :  { %1402 = vmatpush3.bf16.msra.mxu1 %v1401_v54 }
 0x38f   :  { %1382 = vmatpush3.bf16.msra.mxu0 %v1381_v61 }
 0x390   :  { %1384 = vmatprep.subr.bf16.mxu0 %v1383_v0  ;;  %v1407_v0 = vpack.c.bf16 %v874_v63, %v873_v62 }
 0x393   :  { %1386 = vmatpush3.bf16.msra.mxu0 %v1385_v3  ;;  %v1409_v3 = vpack.c.bf16 %v858_v2, %v857_v1 }
 0x394   :  { %1388 = vmatprep.subr.bf16.mxu0 %v1387_v6  ;;  %v1411_v6 = vpack.c.bf16 %v876_v5, %v875_v4 }
 0x397   :  { %1390 = vmatpush3.bf16.msra.mxu0 %v1389_v11  ;;  %v1413_v11 = vpack.c.bf16 %v860_v10, %v859_v9 }
 0x398   :  { %1392 = vmatprep.subr.bf16.mxu0 %v1391_v14  ;;  %v1415_v14 = vpack.c.bf16 %v878_v13, %v877_v12 }
 0x39b   :  { %1394 = vmatpush3.bf16.msra.mxu0 %v1393_v17  ;;  %v1417_v17 = vpack.c.bf16 %v862_v16, %v861_v15 }
 0x453   :  { %v1153_v18 = vpop.f32.mrb[4].mxu1 }
 0x454   :  { %v1154_v21 = vpop.f32.mrb[5].mxu1 }
 0x455   :  { %v1155_v22 = vadd.f32 %v1154_v21, %v1153_v18  ;;  %v879_v18 = vld [vmem:[#allocation13 + $0xe0] sm:$0xff] }
 0x457   :  { %v681_v23 = vadd.f32 %v1155_v22, %v1000_v19  ;;  %v1156_v24 = vpop.f32.mrb[6].mxu1  ;;  %v863_v22 = vld [vmem:[#allocation13 + $0x60] sm:$0xff] }
 0x458   :  { %v1157_v25 = vpop.f32.mrb[7].mxu1 }
 0x459   :  { %v689_v26 = vmul.f32 0.5, %v681_v23  ;;  %v1158_v27 = vadd.f32 %v1157_v25, %v1156_v24  ;;  %v881_v25 = vld [vmem:[#allocation13 + $0xf0] sm:$0xff] }
 0x45b   :  { %1449 = vtanh.f32 %v689_v26  ;;  %v686_v28 = vadd.f32 %v1158_v27, %v1000_v19  ;;  %v880_v19 = vld [vmem:[#allocation13 + $0xe8] sm:$0xff]  ;;  %v882_v26 = vld [vmem:[#allocation13 + $0xf8] sm:$0xff] }
 0x45c   :  { %v1419_v21 = vpack.c.bf16 %v880_v19, %v879_v18  ;;  %v1423_v27 = vpack.c.bf16 %v882_v26, %v881_v25 }
 0x45d   :  { %v690_v29 = vmul.f32 0.5, %v686_v28 }
 0x45f   :  { %1451 = vtanh.f32 %v690_v29  ;;  %v866_v29 = vld [vmem:[#allocation13 + $0x78] sm:$0xff] }
 0x465   :  { %v1450_v30 = vpop.eup %1449 }
 0x466   :  { %v693_v31 = vmul.f32 0.5, %v1450_v30 }
 0x468   :  { %v695_v33 = vadd.f32 0.5, %v693_v31 }
 0x469   :  { %v1452_v32 = vpop.eup %1451 }
 0x46a   :  { %v694_v34 = vmul.f32 0.5, %v1452_v32  ;;  %v697_v36 = vmul.f32 %v695_v33, %v681_v23  ;;  %v864_v23 = vld [vmem:[#allocation13 + $0x68] sm:$0xff]  ;;  %v1001_v32 = vld [vmem:[%s1968_s10] ss:$0 sm:$0xff] }
 0x46b   :  { %v1421_v24 = vpack.c.bf16 %v864_v23, %v863_v22 }
 0x46c   :  { %v696_v35 = vadd.f32 0.5, %v694_v34  ;;  %v705_v39 = vrot.slane %v697_v36, 7 }
 0x46e   :  { %v698_v37 = vmul.f32 %v696_v35, %v686_v28  ;;  %v865_v28 = vld [vmem:[#allocation13 + $0x70] sm:$0xff] }
 0x46f   :  { %v1425_v30 = vpack.c.bf16 %v866_v29, %v865_v28 }
 0x470   :  { %v700_v38 = vsel %vm415_vm2, %v698_v37, 0.0 }
 0x471   :  { %v706_v40 = vrot.slane %v700_v38, 7 }
 0x473   :  { %v708_v41 = vsel %vm568_vm4, %v706_v40, %v705_v39  ;;  %v707_v42 = vsel %vm568_vm4, %v705_v39, %v706_v40 }
 0x474   :  { %v709_v7 = vadd.f32 %v708_v41, %v697_v36  ;;  %v710_v43 = vadd.f32 %v707_v42, %v700_v38 }
 0x476   :  { %816 = vmatprep.mubr.f32.mxu0 %v709_v7 }
 0x477   :  { %817 = vmatmul.mubr.f32.vlgmr.msra.gmra.mrb[8].mxu0 %v1868_v59  ;;  %v871_v59 = vld [vmem:[#allocation13 + $0xa0] sm:$0xff] }
 0x478   :  { %821 = vmatprep.mubr.f32.mxu0 %v710_v43  ;;  %v1403_v57 = vpack.c.bf16 %v872_v55, %v871_v59  ;;  %v1461_v59 = vld [vmem:[#allocation5] sm:$0xff]  ;;  %v1462_v55 = vld [vmem:[#allocation5 + $0x8] sm:$0xff] }
 0x47a   :  { %1404 = vmatprep.subr.bf16.mxu1 %v1403_v57 }
 0x47b   :  { %1006 = vmatmul.mubr.msk.f32.gmra.mrb[10].mxu0 %vm275_vm1, %v1871_v60  ;;  %v855_v60 = vld [vmem:[#allocation13 + $0x20] sm:$0xff] }
 0x47c   :  { %v1405_v61 = vpack.c.bf16 %v856_v58, %v855_v60 }
 0x47e   :  { %1406 = vmatpush3.bf16.msra.mxu1 %v1405_v61 }
 0x47f   :  { %1408 = vmatprep.subr.bf16.mxu1 %v1407_v0 }
 0x482   :  { %1410 = vmatpush3.bf16.msra.mxu1 %v1409_v3 }
 0x483   :  { %1412 = vmatprep.subr.bf16.mxu1 %v1411_v6 }
 0x486   :  { %1414 = vmatpush3.bf16.msra.mxu1 %v1413_v11 }
 0x487   :  { %1416 = vmatprep.subr.bf16.mxu1 %v1415_v14 }
 0x48a   :  { %1418 = vmatpush3.bf16.msra.mxu1 %v1417_v17 }
 0x48b   :  { %1420 = vmatprep.subr.bf16.mxu1 %v1419_v21 }
 0x48e   :  { %1422 = vmatpush3.bf16.msra.mxu1 %v1421_v24 }
 0x48f   :  { %1424 = vmatprep.subr.bf16.mxu1 %v1423_v27 }
 0x492   :  { %1426 = vmatpush3.bf16.msra.mxu1 %v1425_v30 }
 0x54a   :  { %v1191_v31 = vpop.f32.mrb[8].mxu0 }
 0x54b   :  { %v1192_v33 = vpop.f32.mrb[9].mxu0 }
 0x54c   :  { %v1193_v34 = vadd.f32 %v1192_v33, %v1191_v31 }
 0x54e   :  { %v819_v35 = vadd.f32 %v1193_v34, %v1001_v32  ;;  %v1194_v36 = vpop.f32.mrb[10].mxu0 }
 0x54f   :  { %v1195_v37 = vpop.f32.mrb[11].mxu0 }
 0x550   :  { %v827_v38 = vmul.f32 0.5, %v819_v35  ;;  %v1196_v39 = vadd.f32 %v1195_v37, %v1194_v36 }
 0x552   :  { %1453 = vtanh.f32 %v827_v38  ;;  %v824_v40 = vadd.f32 %v1196_v39, %v1001_v32 }
 0x554   :  { %v828_v41 = vmul.f32 0.5, %v824_v40 }
 0x556   :  { %1455 = vtanh.f32 %v828_v41 }
 0x55c   :  { %v1454_v42 = vpop.eup %1453 }
 0x55d   :  { %v831_v7 = vmul.f32 0.5, %v1454_v42 }
 0x55f   :  { %v833_v44 = vadd.f32 0.5, %v831_v7 }
 0x560   :  { %v1456_v43 = vpop.eup %1455 }
 0x561   :  { %v832_v8 = vmul.f32 0.5, %v1456_v43  ;;  %v835_v46 = vmul.f32 %v833_v44, %v819_v35 }
 0x563   :  { %v834_v45 = vadd.f32 0.5, %v832_v8  ;;  %v843_v49 = vrot.slane %v835_v46, 7 }
 0x565   :  { %v836_v47 = vmul.f32 %v834_v45, %v824_v40 }
 0x567   :  { %v838_v48 = vsel %vm275_vm1, %v836_v47, 0.0 }
 0x568   :  { %v844_v50 = vrot.slane %v838_v48, 7 }
 0x56a   :  { %v846_v51 = vsel %vm568_vm4, %v844_v50, %v843_v49  ;;  %v845_v52 = vsel %vm568_vm4, %v843_v49, %v844_v50 }
 0x56b   :  { %v847_v53 = vadd.f32 %v846_v51, %v835_v46  ;;  %v848_v54 = vadd.f32 %v845_v52, %v838_v48 }
 0x56d   :  { %954 = vmatprep.mubr.f32.mxu1 %v847_v53 }
 0x56e   :  { %955 = vmatmul.mubr.f32.vlgmr.msra.gmra.mrb[8].mxu1 %v1461_v59 }
 0x56f   :  { %959 = vmatprep.mubr.f32.mxu1 %v848_v54 }
 0x572   :  { %960 = vmatmul.mubr.f32.gmra.mrb[10].mxu1 %v1462_v55 }
 0x641   :  { %v1229_v57 = vpop.f32.mrb[8].mxu1 }
 0x642   :  { %v1230_v60 = vpop.f32.mrb[9].mxu1 }
 0x643   :  { %v1231_v58 = vadd.f32 %v1230_v60, %v1229_v57 }
 0x645   :  { %v957_v61 = vadd.f32 %v1231_v58, %v1002_v56  ;;  %v1232_v62 = vpop.f32.mrb[10].mxu1 }
 0x646   :  { %v1233_v63 = vpop.f32.mrb[11].mxu1 }
 0x647   :  { %v965_v20 = vmul.f32 0.5, %v957_v61  ;;  %v1234_v0 = vadd.f32 %v1233_v63, %v1232_v62 }
 0x649   :  { %1457 = vtanh.f32 %v965_v20  ;;  %v962_v1 = vadd.f32 %v1234_v0, %v1002_v56 }
 0x64b   :  { %v966_v2 = vmul.f32 0.5, %v962_v1 }
 0x64d   :  { %1459 = vtanh.f32 %v966_v2 }
 0x653   :  { %v1458_v3 = vpop.eup %1457 }
 0x654   :  { %v969_v4 = vmul.f32 0.5, %v1458_v3 }
 0x656   :  { %v971_v5 = vadd.f32 0.5, %v969_v4 }
 0x657   :  { %v1460_v6 = vpop.eup %1459 }
 0x658   :  { %v973_v9 = vmul.f32 %v971_v5, %v957_v61  ;;  %v970_v10 = vmul.f32 0.5, %v1460_v6 }
 0x65a   :  { %975 = vst [vmem:[#allocation17] sm:$0xff] %v973_v9  ;;  %v972_v11 = vadd.f32 0.5, %v970_v10 }
 0x65c   :  { %v974_v12 = vmul.f32 %v972_v11, %v962_v1 }
 0x65e   :  { %976 = vst [vmem:[#allocation17 + $0x8] sm:$0xff] %v974_v12 }
 0x65f   :  { %1628 = shalt.err (!%p1625_p4)
}
 0x660   :  { %s1629_s15 = scalar_lea.hbm %s1971_s13, 256 }
 0x661   :  { %p1630_p5 = scmp.ne.s32.totalorder %s1971_s13, %s1629_s15  ;;  %p1633_p6 = scmp.lt.u32.totalorder %s1629_s15, %s1971_s13 }
 0x663   :  { %p1635_p7 = pnand %p1633_p6, %p1630_p5 }
 0x665   :  { %1638 = shalt.err (!%p1635_p7)
}
 0x666   :  { %988 = dma.vmem_to_hbm [thread:$0]  %s983_s3, 256, %s1971_s13, [#allocation7], %s1651_s20, %s1651_s20, %s1652_s21  }
 0x667   :  { %1647 = dma.done.wait [#allocation7], 256  }
 0x668   :  { %1648 = vsyncadd [#allocation7], 4294967040 }
 0x669   :  { %992 = vsyncpa [#allocation6], 1 }
 0x66a   :  { %993 = vsyncpa [#allocation9], 1 }
 0x66b   :  { %994 = vsyncpa [#allocation12], 1 }
 0x66c   :  { %995 = vsyncpa [#allocation15], 1 }
 0x66d   :  { %996 = vsyncpa [#allocation7], 1 }

</bundles_post_ra>
